<compile_context>
chip_gen: v5e
topology: v5e:2x2
jax: 0.10.0
libtpu: 0.0.40
codegen_flags: <defaults>
</compile_context>

<pallas_src>
import functools

import jax
import jax.numpy as jnp
import numpy as np
from jax.experimental import pallas as pl
from jax.experimental.pallas import tpu as pltpu


def _conv_boundary_masks(N, H, W):
    """(9, N*H*W) f32 masks: mask[k, q] == 1 iff tap k of output pixel q reads
    a pixel inside the (conceptually zero-padded) image."""
    q = np.arange(N * H * W)
    h = (q // W) % H
    w = q % W
    m = np.zeros((9, N * H * W), np.float32)
    for k in range(9):
        oy, ox = k // 3 - 1, k % 3 - 1
        m[k] = ((h + oy >= 0) & (h + oy < H) & (w + ox >= 0) & (w + ox < W))
    return m


def _make_kernel(C, W, NHW, eps):
    def conv3x3(x, wm_ref, mask_ref, patch_ref):
        # im2col: 9 lane-rotated + boundary-masked copies of x, written once
        # into the (9*C, NHW) VMEM scratch (rows k*C .. k*C+C-1 = tap k).
        for k in range(9):
            oy, ox = k // 3 - 1, k % 3 - 1
            s = oy * W + ox                         # flat lane offset of tap k
            shifted = x if s == 0 else pltpu.roll(x, shift=(-s) % NHW, axis=1)
            patch_ref[k * C:(k + 1) * C, :] = shifted * mask_ref[k:k + 1, :]
        # one MXU matmul per conv: (C, 9C) @ (9C, NHW) -> (C, NHW)
        return jnp.dot(wm_ref[...], patch_ref[...],
                       preferred_element_type=jnp.float32)

    def batchnorm(h, g_ref, b_ref):
        # training-mode BN, single-pass statistics (sum & sum of squares)
        inv_n = 1.0 / NHW
        mean = jnp.sum(h, axis=1, keepdims=True) * inv_n             # (C, 1)
        ex2 = jnp.sum(h * h, axis=1, keepdims=True) * inv_n          # (C, 1)
        var = ex2 - mean * mean                                      # biased
        scale = jax.lax.rsqrt(var + eps) * g_ref[...]
        return (h - mean) * scale + b_ref[...]

    def kernel(x_ref, mask_ref, wm1_ref, g1_ref, b1_ref,
               wm2_ref, g2_ref, b2_ref, o_ref, patch_ref):
        x = x_ref[...]                                               # (C, NHW)
        # ---- F branch: Conv -> BN -> ReLU -> Conv -> BN ----
        h = conv3x3(x, wm1_ref, mask_ref, patch_ref)
        h = jnp.maximum(batchnorm(h, g1_ref, b1_ref), 0.0)
        h = conv3x3(h, wm2_ref, mask_ref, patch_ref)
        h = batchnorm(h, g2_ref, b2_ref)
        # ---- identity shortcut + final ReLU (lane-dense store) ----
        o_ref[...] = jnp.maximum(h + x, 0.0)

    return kernel


@functools.partial(jax.jit, static_argnames=("eps",))
def residual_block(x_nchw, w1, g1, b1, w2, g2, b2, eps=1e-5):
    """x_nchw: (N, C, H, W) f32; w1/w2: (3, 3, Cin, Cout) f32 (HWIO)."""
    N, C, H, W = x_nchw.shape
    HW, NHW = H * W, N * H * W

    # channel-major, lane-dense layout: (C, N*H*W).  No padding, no NHWC.
    xc = jnp.transpose(x_nchw.reshape(N, C, HW), (1, 0, 2)).reshape(C, NHW)
    xc = xc.astype(jnp.float32)

    # (C_out, 9*C_in) weight matrices matching the im2col row order k*C + ci
    wm1 = w1.reshape(9 * C, C).T.astype(jnp.float32)
    wm2 = w2.reshape(9 * C, C).T.astype(jnp.float32)
    g1c = g1.reshape(C, 1).astype(jnp.float32)
    b1c = b1.reshape(C, 1).astype(jnp.float32)
    g2c = g2.reshape(C, 1).astype(jnp.float32)
    b2c = b2.reshape(C, 1).astype(jnp.float32)
    masks = jnp.asarray(_conv_boundary_masks(N, H, W))               # (9, NHW)

    vmem = pl.BlockSpec(memory_space=pltpu.MemorySpace.VMEM)
    out = pl.pallas_call(
        _make_kernel(C, W, NHW, eps),
        out_shape=jax.ShapeDtypeStruct((C, NHW), jnp.float32),
        in_specs=[vmem] * 8,
        out_specs=vmem,
        scratch_shapes=[pltpu.VMEM((9 * C, NHW), jnp.float32)],      # im2col
        compiler_params=pltpu.CompilerParams(
            vmem_limit_bytes=32 * 1024 * 1024),
    )(xc, masks, wm1, g1c, b1c, wm2, g2c, b2c)

    # back to NCHW (pure regroup of the flattened pixel axis, tiny)
    return jnp.transpose(out.reshape(C, N, HW), (1, 0, 2)).reshape(N, C, H, W)


def reference(x, w1, g1, b1, w2, g2, b2, eps=1e-5):
    """Plain-JAX reference (NCHW), mirrors torch training-mode forward."""
    def conv3x3(h, w):
        return jax.lax.conv_general_dilated(
            h, w, window_strides=(1, 1), padding="SAME",
            dimension_numbers=("NCHW", "HWIO", "NCHW"),
            precision=jax.lax.Precision.HIGHEST)

    def bn(h, g, b):
        mean = h.mean(axis=(0, 2, 3), keepdims=True)
        var = h.var(axis=(0, 2, 3), keepdims=True)   # biased, like torch BN fwd
        return (h - mean) / jnp.sqrt(var + eps) * g.reshape(1, -1, 1, 1) \
               + b.reshape(1, -1, 1, 1)

    h = jax.nn.relu(bn(conv3x3(x, w1), g1, b1))
    h = bn(conv3x3(h, w2), g2, b2)
    return jax.nn.relu(h + x)


if __name__ == "__main__":
    N, C, H, W = 2, 4, 16, 16           # inplanes == planes == 4, stride == 1
    key = jax.random.PRNGKey(0)
    k1, k2, kx = jax.random.split(key, 3)

    fan_in = 9 * C
    w1 = jax.random.normal(k1, (3, 3, C, C), jnp.float32) / np.sqrt(fan_in)
    w2 = jax.random.normal(k2, (3, 3, C, C), jnp.float32) / np.sqrt(fan_in)
    g1 = jnp.ones((C,), jnp.float32)    # BatchNorm2d default init
    b1 = jnp.zeros((C,), jnp.float32)
    g2 = jnp.ones((C,), jnp.float32)
    b2 = jnp.zeros((C,), jnp.float32)
    x = jax.random.normal(kx, (N, C, H, W), jnp.float32)

    y = residual_block(x, w1, g1, b1, w2, g2, b2)
    y = jax.block_until_ready(y)

    y_ref = reference(x, w1, g1, b1, w2, g2, b2)
    assert y.shape == (N, C, H, W)
    np.testing.assert_allclose(np.asarray(y), np.asarray(y_ref),
                               rtol=2e-3, atol=2e-3)
    print("KERNEL_OK")
</pallas_src>

<mosaic_0001>
module attributes {stable_mosaic.version = 11 : i64} {
  func.func @kernel(%arg0: memref<4x512xf32, #tpu.memory_space<vmem>>, %arg1: memref<9x512xf32, #tpu.memory_space<vmem>>, %arg2: memref<4x36xf32, #tpu.memory_space<vmem>>, %arg3: memref<4x1xf32, #tpu.memory_space<vmem>>, %arg4: memref<4x1xf32, #tpu.memory_space<vmem>>, %arg5: memref<4x36xf32, #tpu.memory_space<vmem>>, %arg6: memref<4x1xf32, #tpu.memory_space<vmem>>, %arg7: memref<4x1xf32, #tpu.memory_space<vmem>>, %arg8: memref<4x512xf32, #tpu.memory_space<vmem>>, %arg9: memref<36x512xf32, #tpu.memory_space<vmem>>) attributes {dimension_semantics = [], scalar_prefetch = 0 : i64, scratch_operands = 1 : i64, tpu.core_type = #tpu.core_type<tc>} {
    %c0 = arith.constant 0 : index
    %c0_0 = arith.constant 0 : index
    %0 = vector.load %arg0[%c0, %c0_0] : memref<4x512xf32, #tpu.memory_space<vmem>>, vector<4x512xf32>
    %c17_i32 = arith.constant 17 : i32
    %1 = tpu.dynamic_rotate %0 by %c17_i32 dim 1 : vector<4x512xf32>, i32 -> vector<4x512xf32>
    %c0_1 = arith.constant 0 : index
    %c0_2 = arith.constant 0 : index
    %2 = vector.load %arg1[%c0_1, %c0_2] : memref<9x512xf32, #tpu.memory_space<vmem>>, vector<1x512xf32>
    %3 = vector.broadcast %2 : vector<1x512xf32> to vector<4x512xf32>
    %4 = arith.mulf %1, %3 : vector<4x512xf32>
    %c0_3 = arith.constant 0 : index
    %c0_4 = arith.constant 0 : index
    %5 = vector.load %arg9[%c0_3, %c0_4] : memref<36x512xf32, #tpu.memory_space<vmem>>, vector<4x512xf32>
    tpu.vector_store %arg9[%c0_3, %c0_4], %4 {strides = array<i32>} : memref<36x512xf32, #tpu.memory_space<vmem>>, vector<4x512xf32>,
    %c16_i32 = arith.constant 16 : i32
    %6 = tpu.dynamic_rotate %0 by %c16_i32 dim 1 : vector<4x512xf32>, i32 -> vector<4x512xf32>
    %c1 = arith.constant 1 : index
    %c0_5 = arith.constant 0 : index
    %7 = vector.load %arg1[%c1, %c0_5] : memref<9x512xf32, #tpu.memory_space<vmem>>, vector<1x512xf32>
    %8 = vector.broadcast %7 : vector<1x512xf32> to vector<4x512xf32>
    %9 = arith.mulf %6, %8 : vector<4x512xf32>
    %c4 = arith.constant 4 : index
    %c0_6 = arith.constant 0 : index
    %10 = vector.load %arg9[%c4, %c0_6] : memref<36x512xf32, #tpu.memory_space<vmem>>, vector<4x512xf32>
    tpu.vector_store %arg9[%c4, %c0_6], %9 {strides = array<i32>} : memref<36x512xf32, #tpu.memory_space<vmem>>, vector<4x512xf32>,
    %c15_i32 = arith.constant 15 : i32
    %11 = tpu.dynamic_rotate %0 by %c15_i32 dim 1 : vector<4x512xf32>, i32 -> vector<4x512xf32>
    %c2 = arith.constant 2 : index
    %c0_7 = arith.constant 0 : index
    %12 = vector.load %arg1[%c2, %c0_7] : memref<9x512xf32, #tpu.memory_space<vmem>>, vector<1x512xf32>
    %13 = vector.broadcast %12 : vector<1x512xf32> to vector<4x512xf32>
    %14 = arith.mulf %11, %13 : vector<4x512xf32>
    %c8 = arith.constant 8 : index
    %c0_8 = arith.constant 0 : index
    %15 = vector.load %arg9[%c8, %c0_8] : memref<36x512xf32, #tpu.memory_space<vmem>>, vector<4x512xf32>
    tpu.vector_store %arg9[%c8, %c0_8], %14 {strides = array<i32>} : memref<36x512xf32, #tpu.memory_space<vmem>>, vector<4x512xf32>,
    %c1_i32 = arith.constant 1 : i32
    %16 = tpu.dynamic_rotate %0 by %c1_i32 dim 1 : vector<4x512xf32>, i32 -> vector<4x512xf32>
    %c3 = arith.constant 3 : index
    %c0_9 = arith.constant 0 : index
    %17 = vector.load %arg1[%c3, %c0_9] : memref<9x512xf32, #tpu.memory_space<vmem>>, vector<1x512xf32>
    %18 = vector.broadcast %17 : vector<1x512xf32> to vector<4x512xf32>
    %19 = arith.mulf %16, %18 : vector<4x512xf32>
    %c12 = arith.constant 12 : index
    %c0_10 = arith.constant 0 : index
    %20 = vector.load %arg9[%c12, %c0_10] : memref<36x512xf32, #tpu.memory_space<vmem>>, vector<4x512xf32>
    tpu.vector_store %arg9[%c12, %c0_10], %19 {strides = array<i32>} : memref<36x512xf32, #tpu.memory_space<vmem>>, vector<4x512xf32>,
    %c4_11 = arith.constant 4 : index
    %c0_12 = arith.constant 0 : index
    %21 = vector.load %arg1[%c4_11, %c0_12] : memref<9x512xf32, #tpu.memory_space<vmem>>, vector<1x512xf32>
    %22 = vector.broadcast %21 : vector<1x512xf32> to vector<4x512xf32>
    %23 = arith.mulf %0, %22 : vector<4x512xf32>
    %c16 = arith.constant 16 : index
    %c0_13 = arith.constant 0 : index
    %24 = vector.load %arg9[%c16, %c0_13] : memref<36x512xf32, #tpu.memory_space<vmem>>, vector<4x512xf32>
    tpu.vector_store %arg9[%c16, %c0_13], %23 {strides = array<i32>} : memref<36x512xf32, #tpu.memory_space<vmem>>, vector<4x512xf32>,
    %c511_i32 = arith.constant 511 : i32
    %25 = tpu.dynamic_rotate %0 by %c511_i32 dim 1 : vector<4x512xf32>, i32 -> vector<4x512xf32>
    %c5 = arith.constant 5 : index
    %c0_14 = arith.constant 0 : index
    %26 = vector.load %arg1[%c5, %c0_14] : memref<9x512xf32, #tpu.memory_space<vmem>>, vector<1x512xf32>
    %27 = vector.broadcast %26 : vector<1x512xf32> to vector<4x512xf32>
    %28 = arith.mulf %25, %27 : vector<4x512xf32>
    %c20 = arith.constant 20 : index
    %c0_15 = arith.constant 0 : index
    %29 = vector.load %arg9[%c20, %c0_15] : memref<36x512xf32, #tpu.memory_space<vmem>>, vector<4x512xf32>
    tpu.vector_store %arg9[%c20, %c0_15], %28 {strides = array<i32>} : memref<36x512xf32, #tpu.memory_space<vmem>>, vector<4x512xf32>,
    %c497_i32 = arith.constant 497 : i32
    %30 = tpu.dynamic_rotate %0 by %c497_i32 dim 1 : vector<4x512xf32>, i32 -> vector<4x512xf32>
    %c6 = arith.constant 6 : index
    %c0_16 = arith.constant 0 : index
    %31 = vector.load %arg1[%c6, %c0_16] : memref<9x512xf32, #tpu.memory_space<vmem>>, vector<1x512xf32>
    %32 = vector.broadcast %31 : vector<1x512xf32> to vector<4x512xf32>
    %33 = arith.mulf %30, %32 : vector<4x512xf32>
    %c24 = arith.constant 24 : index
    %c0_17 = arith.constant 0 : index
    %34 = vector.load %arg9[%c24, %c0_17] : memref<36x512xf32, #tpu.memory_space<vmem>>, vector<4x512xf32>
    tpu.vector_store %arg9[%c24, %c0_17], %33 {strides = array<i32>} : memref<36x512xf32, #tpu.memory_space<vmem>>, vector<4x512xf32>,
    %c496_i32 = arith.constant 496 : i32
    %35 = tpu.dynamic_rotate %0 by %c496_i32 dim 1 : vector<4x512xf32>, i32 -> vector<4x512xf32>
    %c7 = arith.constant 7 : index
    %c0_18 = arith.constant 0 : index
    %36 = vector.load %arg1[%c7, %c0_18] : memref<9x512xf32, #tpu.memory_space<vmem>>, vector<1x512xf32>
    %37 = vector.broadcast %36 : vector<1x512xf32> to vector<4x512xf32>
    %38 = arith.mulf %35, %37 : vector<4x512xf32>
    %c28 = arith.constant 28 : index
    %c0_19 = arith.constant 0 : index
    %39 = vector.load %arg9[%c28, %c0_19] : memref<36x512xf32, #tpu.memory_space<vmem>>, vector<4x512xf32>
    tpu.vector_store %arg9[%c28, %c0_19], %38 {strides = array<i32>} : memref<36x512xf32, #tpu.memory_space<vmem>>, vector<4x512xf32>,
    %c495_i32 = arith.constant 495 : i32
    %40 = tpu.dynamic_rotate %0 by %c495_i32 dim 1 : vector<4x512xf32>, i32 -> vector<4x512xf32>
    %c8_20 = arith.constant 8 : index
    %c0_21 = arith.constant 0 : index
    %41 = vector.load %arg1[%c8_20, %c0_21] : memref<9x512xf32, #tpu.memory_space<vmem>>, vector<1x512xf32>
    %42 = vector.broadcast %41 : vector<1x512xf32> to vector<4x512xf32>
    %43 = arith.mulf %40, %42 : vector<4x512xf32>
    %c32 = arith.constant 32 : index
    %c0_22 = arith.constant 0 : index
    %44 = vector.load %arg9[%c32, %c0_22] : memref<36x512xf32, #tpu.memory_space<vmem>>, vector<4x512xf32>
    tpu.vector_store %arg9[%c32, %c0_22], %43 {strides = array<i32>} : memref<36x512xf32, #tpu.memory_space<vmem>>, vector<4x512xf32>,
    %c0_23 = arith.constant 0 : index
    %c0_24 = arith.constant 0 : index
    %45 = vector.load %arg2[%c0_23, %c0_24] : memref<4x36xf32, #tpu.memory_space<vmem>>, vector<4x36xf32>
    %c0_25 = arith.constant 0 : index
    %c0_26 = arith.constant 0 : index
    %46 = vector.load %arg9[%c0_25, %c0_26] : memref<36x512xf32, #tpu.memory_space<vmem>>, vector<36x512xf32>
    %cst = arith.constant dense<0.000000e+00> : vector<4x512xf32>
    %47 = tpu.matmul %45, %46, %cst {dimension_numbers = #tpu.dot_dimension_numbers<[1], [0], [0], [1], [0, 0, 1, 1], [], []>} : vector<4x36xf32>, vector<36x512xf32>, vector<4x512xf32> -> vector<4x512xf32>
    %cst_27 = arith.constant dense<0.000000e+00> : vector<4xf32>
    %48 = vector.multi_reduction <add>, %47, %cst_27 [1] : vector<4x512xf32> to vector<4xf32>
    %49 = vector.shape_cast %48 : vector<4xf32> to vector<4x1xf32>
    %cst_28 = arith.constant 0.001953125 : f32
    %50 = vector.broadcast %cst_28 : f32 to vector<4x1xf32>
    %51 = arith.mulf %49, %50 : vector<4x1xf32>
    %52 = arith.mulf %47, %47 : vector<4x512xf32>
    %cst_29 = arith.constant dense<0.000000e+00> : vector<4xf32>
    %53 = vector.multi_reduction <add>, %52, %cst_29 [1] : vector<4x512xf32> to vector<4xf32>
    %54 = vector.shape_cast %53 : vector<4xf32> to vector<4x1xf32>
    %cst_30 = arith.constant 0.001953125 : f32
    %55 = vector.broadcast %cst_30 : f32 to vector<4x1xf32>
    %56 = arith.mulf %54, %55 : vector<4x1xf32>
    %57 = arith.mulf %51, %51 : vector<4x1xf32>
    %58 = arith.subf %56, %57 : vector<4x1xf32>
    %cst_31 = arith.constant 9.99999974E-6 : f32
    %59 = vector.broadcast %cst_31 : f32 to vector<4x1xf32>
    %60 = arith.addf %58, %59 : vector<4x1xf32>
    %61 = math.rsqrt %60 : vector<4x1xf32>
    %c0_32 = arith.constant 0 : index
    %c0_33 = arith.constant 0 : index
    %62 = vector.load %arg3[%c0_32, %c0_33] : memref<4x1xf32, #tpu.memory_space<vmem>>, vector<4x1xf32>
    %63 = arith.mulf %61, %62 : vector<4x1xf32>
    %64 = vector.broadcast %51 : vector<4x1xf32> to vector<4x512xf32>
    %65 = arith.subf %47, %64 : vector<4x512xf32>
    %66 = vector.broadcast %63 : vector<4x1xf32> to vector<4x512xf32>
    %67 = arith.mulf %65, %66 : vector<4x512xf32>
    %c0_34 = arith.constant 0 : index
    %c0_35 = arith.constant 0 : index
    %68 = vector.load %arg4[%c0_34, %c0_35] : memref<4x1xf32, #tpu.memory_space<vmem>>, vector<4x1xf32>
    %69 = vector.broadcast %68 : vector<4x1xf32> to vector<4x512xf32>
    %70 = arith.addf %67, %69 : vector<4x512xf32>
    %cst_36 = arith.constant 0.000000e+00 : f32
    %71 = vector.broadcast %cst_36 : f32 to vector<4x512xf32>
    %72 = arith.maximumf %70, %71 : vector<4x512xf32>
    %c17_i32_37 = arith.constant 17 : i32
    %73 = tpu.dynamic_rotate %72 by %c17_i32_37 dim 1 : vector<4x512xf32>, i32 -> vector<4x512xf32>
    %c0_38 = arith.constant 0 : index
    %c0_39 = arith.constant 0 : index
    %74 = vector.load %arg1[%c0_38, %c0_39] : memref<9x512xf32, #tpu.memory_space<vmem>>, vector<1x512xf32>
    %75 = vector.broadcast %74 : vector<1x512xf32> to vector<4x512xf32>
    %76 = arith.mulf %73, %75 : vector<4x512xf32>
    %c0_40 = arith.constant 0 : index
    %c0_41 = arith.constant 0 : index
    %77 = vector.load %arg9[%c0_40, %c0_41] : memref<36x512xf32, #tpu.memory_space<vmem>>, vector<4x512xf32>
    tpu.vector_store %arg9[%c0_40, %c0_41], %76 {strides = array<i32>} : memref<36x512xf32, #tpu.memory_space<vmem>>, vector<4x512xf32>,
    %c16_i32_42 = arith.constant 16 : i32
    %78 = tpu.dynamic_rotate %72 by %c16_i32_42 dim 1 : vector<4x512xf32>, i32 -> vector<4x512xf32>
    %c1_43 = arith.constant 1 : index
    %c0_44 = arith.constant 0 : index
    %79 = vector.load %arg1[%c1_43, %c0_44] : memref<9x512xf32, #tpu.memory_space<vmem>>, vector<1x512xf32>
    %80 = vector.broadcast %79 : vector<1x512xf32> to vector<4x512xf32>
    %81 = arith.mulf %78, %80 : vector<4x512xf32>
    %c4_45 = arith.constant 4 : index
    %c0_46 = arith.constant 0 : index
    %82 = vector.load %arg9[%c4_45, %c0_46] : memref<36x512xf32, #tpu.memory_space<vmem>>, vector<4x512xf32>
    tpu.vector_store %arg9[%c4_45, %c0_46], %81 {strides = array<i32>} : memref<36x512xf32, #tpu.memory_space<vmem>>, vector<4x512xf32>,
    %c15_i32_47 = arith.constant 15 : i32
    %83 = tpu.dynamic_rotate %72 by %c15_i32_47 dim 1 : vector<4x512xf32>, i32 -> vector<4x512xf32>
    %c2_48 = arith.constant 2 : index
    %c0_49 = arith.constant 0 : index
    %84 = vector.load %arg1[%c2_48, %c0_49] : memref<9x512xf32, #tpu.memory_space<vmem>>, vector<1x512xf32>
    %85 = vector.broadcast %84 : vector<1x512xf32> to vector<4x512xf32>
    %86 = arith.mulf %83, %85 : vector<4x512xf32>
    %c8_50 = arith.constant 8 : index
    %c0_51 = arith.constant 0 : index
    %87 = vector.load %arg9[%c8_50, %c0_51] : memref<36x512xf32, #tpu.memory_space<vmem>>, vector<4x512xf32>
    tpu.vector_store %arg9[%c8_50, %c0_51], %86 {strides = array<i32>} : memref<36x512xf32, #tpu.memory_space<vmem>>, vector<4x512xf32>,
    %c1_i32_52 = arith.constant 1 : i32
    %88 = tpu.dynamic_rotate %72 by %c1_i32_52 dim 1 : vector<4x512xf32>, i32 -> vector<4x512xf32>
    %c3_53 = arith.constant 3 : index
    %c0_54 = arith.constant 0 : index
    %89 = vector.load %arg1[%c3_53, %c0_54] : memref<9x512xf32, #tpu.memory_space<vmem>>, vector<1x512xf32>
    %90 = vector.broadcast %89 : vector<1x512xf32> to vector<4x512xf32>
    %91 = arith.mulf %88, %90 : vector<4x512xf32>
    %c12_55 = arith.constant 12 : index
    %c0_56 = arith.constant 0 : index
    %92 = vector.load %arg9[%c12_55, %c0_56] : memref<36x512xf32, #tpu.memory_space<vmem>>, vector<4x512xf32>
    tpu.vector_store %arg9[%c12_55, %c0_56], %91 {strides = array<i32>} : memref<36x512xf32, #tpu.memory_space<vmem>>, vector<4x512xf32>,
    %c4_57 = arith.constant 4 : index
    %c0_58 = arith.constant 0 : index
    %93 = vector.load %arg1[%c4_57, %c0_58] : memref<9x512xf32, #tpu.memory_space<vmem>>, vector<1x512xf32>
    %94 = vector.broadcast %93 : vector<1x512xf32> to vector<4x512xf32>
    %95 = arith.mulf %72, %94 : vector<4x512xf32>
    %c16_59 = arith.constant 16 : index
    %c0_60 = arith.constant 0 : index
    %96 = vector.load %arg9[%c16_59, %c0_60] : memref<36x512xf32, #tpu.memory_space<vmem>>, vector<4x512xf32>
    tpu.vector_store %arg9[%c16_59, %c0_60], %95 {strides = array<i32>} : memref<36x512xf32, #tpu.memory_space<vmem>>, vector<4x512xf32>,
    %c511_i32_61 = arith.constant 511 : i32
    %97 = tpu.dynamic_rotate %72 by %c511_i32_61 dim 1 : vector<4x512xf32>, i32 -> vector<4x512xf32>
    %c5_62 = arith.constant 5 : index
    %c0_63 = arith.constant 0 : index
    %98 = vector.load %arg1[%c5_62, %c0_63] : memref<9x512xf32, #tpu.memory_space<vmem>>, vector<1x512xf32>
    %99 = vector.broadcast %98 : vector<1x512xf32> to vector<4x512xf32>
    %100 = arith.mulf %97, %99 : vector<4x512xf32>
    %c20_64 = arith.constant 20 : index
    %c0_65 = arith.constant 0 : index
    %101 = vector.load %arg9[%c20_64, %c0_65] : memref<36x512xf32, #tpu.memory_space<vmem>>, vector<4x512xf32>
    tpu.vector_store %arg9[%c20_64, %c0_65], %100 {strides = array<i32>} : memref<36x512xf32, #tpu.memory_space<vmem>>, vector<4x512xf32>,
    %c497_i32_66 = arith.constant 497 : i32
    %102 = tpu.dynamic_rotate %72 by %c497_i32_66 dim 1 : vector<4x512xf32>, i32 -> vector<4x512xf32>
    %c6_67 = arith.constant 6 : index
    %c0_68 = arith.constant 0 : index
    %103 = vector.load %arg1[%c6_67, %c0_68] : memref<9x512xf32, #tpu.memory_space<vmem>>, vector<1x512xf32>
    %104 = vector.broadcast %103 : vector<1x512xf32> to vector<4x512xf32>
    %105 = arith.mulf %102, %104 : vector<4x512xf32>
    %c24_69 = arith.constant 24 : index
    %c0_70 = arith.constant 0 : index
    %106 = vector.load %arg9[%c24_69, %c0_70] : memref<36x512xf32, #tpu.memory_space<vmem>>, vector<4x512xf32>
    tpu.vector_store %arg9[%c24_69, %c0_70], %105 {strides = array<i32>} : memref<36x512xf32, #tpu.memory_space<vmem>>, vector<4x512xf32>,
    %c496_i32_71 = arith.constant 496 : i32
    %107 = tpu.dynamic_rotate %72 by %c496_i32_71 dim 1 : vector<4x512xf32>, i32 -> vector<4x512xf32>
    %c7_72 = arith.constant 7 : index
    %c0_73 = arith.constant 0 : index
    %108 = vector.load %arg1[%c7_72, %c0_73] : memref<9x512xf32, #tpu.memory_space<vmem>>, vector<1x512xf32>
    %109 = vector.broadcast %108 : vector<1x512xf32> to vector<4x512xf32>
    %110 = arith.mulf %107, %109 : vector<4x512xf32>
    %c28_74 = arith.constant 28 : index
    %c0_75 = arith.constant 0 : index
    %111 = vector.load %arg9[%c28_74, %c0_75] : memref<36x512xf32, #tpu.memory_space<vmem>>, vector<4x512xf32>
    tpu.vector_store %arg9[%c28_74, %c0_75], %110 {strides = array<i32>} : memref<36x512xf32, #tpu.memory_space<vmem>>, vector<4x512xf32>,
    %c495_i32_76 = arith.constant 495 : i32
    %112 = tpu.dynamic_rotate %72 by %c495_i32_76 dim 1 : vector<4x512xf32>, i32 -> vector<4x512xf32>
    %c8_77 = arith.constant 8 : index
    %c0_78 = arith.constant 0 : index
    %113 = vector.load %arg1[%c8_77, %c0_78] : memref<9x512xf32, #tpu.memory_space<vmem>>, vector<1x512xf32>
    %114 = vector.broadcast %113 : vector<1x512xf32> to vector<4x512xf32>
    %115 = arith.mulf %112, %114 : vector<4x512xf32>
    %c32_79 = arith.constant 32 : index
    %c0_80 = arith.constant 0 : index
    %116 = vector.load %arg9[%c32_79, %c0_80] : memref<36x512xf32, #tpu.memory_space<vmem>>, vector<4x512xf32>
    tpu.vector_store %arg9[%c32_79, %c0_80], %115 {strides = array<i32>} : memref<36x512xf32, #tpu.memory_space<vmem>>, vector<4x512xf32>,
    %c0_81 = arith.constant 0 : index
    %c0_82 = arith.constant 0 : index
    %117 = vector.load %arg5[%c0_81, %c0_82] : memref<4x36xf32, #tpu.memory_space<vmem>>, vector<4x36xf32>
    %c0_83 = arith.constant 0 : index
    %c0_84 = arith.constant 0 : index
    %118 = vector.load %arg9[%c0_83, %c0_84] : memref<36x512xf32, #tpu.memory_space<vmem>>, vector<36x512xf32>
    %cst_85 = arith.constant dense<0.000000e+00> : vector<4x512xf32>
    %119 = tpu.matmul %117, %118, %cst_85 {dimension_numbers = #tpu.dot_dimension_numbers<[1], [0], [0], [1], [0, 0, 1, 1], [], []>} : vector<4x36xf32>, vector<36x512xf32>, vector<4x512xf32> -> vector<4x512xf32>
    %cst_86 = arith.constant dense<0.000000e+00> : vector<4xf32>
    %120 = vector.multi_reduction <add>, %119, %cst_86 [1] : vector<4x512xf32> to vector<4xf32>
    %121 = vector.shape_cast %120 : vector<4xf32> to vector<4x1xf32>
    %cst_87 = arith.constant 0.001953125 : f32
    %122 = vector.broadcast %cst_87 : f32 to vector<4x1xf32>
    %123 = arith.mulf %121, %122 : vector<4x1xf32>
    %124 = arith.mulf %119, %119 : vector<4x512xf32>
    %cst_88 = arith.constant dense<0.000000e+00> : vector<4xf32>
    %125 = vector.multi_reduction <add>, %124, %cst_88 [1] : vector<4x512xf32> to vector<4xf32>
    %126 = vector.shape_cast %125 : vector<4xf32> to vector<4x1xf32>
    %cst_89 = arith.constant 0.001953125 : f32
    %127 = vector.broadcast %cst_89 : f32 to vector<4x1xf32>
    %128 = arith.mulf %126, %127 : vector<4x1xf32>
    %129 = arith.mulf %123, %123 : vector<4x1xf32>
    %130 = arith.subf %128, %129 : vector<4x1xf32>
    %cst_90 = arith.constant 9.99999974E-6 : f32
    %131 = vector.broadcast %cst_90 : f32 to vector<4x1xf32>
    %132 = arith.addf %130, %131 : vector<4x1xf32>
    %133 = math.rsqrt %132 : vector<4x1xf32>
    %c0_91 = arith.constant 0 : index
    %c0_92 = arith.constant 0 : index
    %134 = vector.load %arg6[%c0_91, %c0_92] : memref<4x1xf32, #tpu.memory_space<vmem>>, vector<4x1xf32>
    %135 = arith.mulf %133, %134 : vector<4x1xf32>
    %136 = vector.broadcast %123 : vector<4x1xf32> to vector<4x512xf32>
    %137 = arith.subf %119, %136 : vector<4x512xf32>
    %138 = vector.broadcast %135 : vector<4x1xf32> to vector<4x512xf32>
    %139 = arith.mulf %137, %138 : vector<4x512xf32>
    %c0_93 = arith.constant 0 : index
    %c0_94 = arith.constant 0 : index
    %140 = vector.load %arg7[%c0_93, %c0_94] : memref<4x1xf32, #tpu.memory_space<vmem>>, vector<4x1xf32>
    %141 = vector.broadcast %140 : vector<4x1xf32> to vector<4x512xf32>
    %142 = arith.addf %139, %141 : vector<4x512xf32>
    %143 = arith.addf %142, %0 : vector<4x512xf32>
    %cst_95 = arith.constant 0.000000e+00 : f32
    %144 = vector.broadcast %cst_95 : f32 to vector<4x512xf32>
    %145 = arith.maximumf %143, %144 : vector<4x512xf32>
    %c0_96 = arith.constant 0 : index
    %c0_97 = arith.constant 0 : index
    %146 = vector.load %arg8[%c0_96, %c0_97] : memref<4x512xf32, #tpu.memory_space<vmem>>, vector<4x512xf32>
    tpu.vector_store %arg8[%c0_96, %c0_97], %145 {strides = array<i32>} : memref<4x512xf32, #tpu.memory_space<vmem>>, vector<4x512xf32>,
    return
  }
}

</mosaic_0001>

<bundles_post_ra>
// kernel: residual_block.1
= control target key start
LH: loop header
LB: loop body
LE: loop exit
PB: predicated region body
PF: predicated region fallthrough
CT: control target
= control target key end

     0   :  { %s1208_s9 = smov 17   ;;  %s1209_s11 = smov 16   ;;  %vm239_vm0 = vcmask 1043456   ;;  %v52_v51 = vlaneseq  ;;  %vm480_vm9 = vcmask 293888   ;;  %s1724_s0 = inlined_call_operand.vmem [shape: f32[4,512], index: 0, kind: input, shape index: {}]   ;;  %s1725_s1 = inlined_call_operand.vmem [shape: f32[9,512], index: 1, kind: input, shape index: {}]   ;;  %s1726_s2 = inlined_call_operand.vmem [shape: f32[4,36], index: 2, kind: input, shape index: {}]   ;;  %s1727_s4 = inlined_call_operand.vmem [shape: f32[4,1], index: 4, kind: input, shape index: {}]   ;;  %s1728_s3 = inlined_call_operand.vmem [shape: f32[4,1], index: 3, kind: input, shape index: {}]   ;;  %s1729_s5 = inlined_call_operand.vmem [shape: f32[4,36], index: 5, kind: input, shape index: {}]   ;;  %s1730_s6 = inlined_call_operand.vmem [shape: f32[4,1], index: 6, kind: input, shape index: {}]   ;;  %s1731_s7 = inlined_call_operand.vmem [shape: f32[4,1], index: 7, kind: input, shape index: {}]   ;;  %s1732_s8 = inlined_call_operand.vmem [shape: f32[4,512], index: 8, kind: output, shape index: {}]  }
   0x1   :  { %v1265_v0 = vld [vmem:[%s1724_s0] sm:$0xff]  ;;  %v1270_v1 = vld [vmem:[%s1724_s0 + $0x8] sm:$0xff]  ;;  %s1210_s12 = smov 15   ;;  %s1211_s13 = smov 1  }
   0x2   :  { %33 = vst [vmem:[#allocation1] ss:$2 sm:$0xff] %v1265_v0  ;;  %v1164_v6 = vld [vmem:[%s1725_s1 + $0x4] ss:$8 sm:$0xf]  ;;  %s1212_s14 = smov 127  }
   0x3   :  { %35 = vst [vmem:[#allocation1 + $0x10] ss:$2 sm:$0xff] %v1270_v1  ;;  %v234_v9 = vperm.slane %v1164_v6, 1  ;;  %v236_v12 = vperm.slane %v1164_v6, 3  ;;  %v233_v13 = vperm.slane %v1164_v6, 0  ;;  %v235_v15 = vperm.slane %v1164_v6, 2 }
   0x4   :  { %s1213_s15 = smov 113   ;;  %s1214_s16 = smov 112   ;;  %v1346_v52 = vld [vmem:[%s1725_s1] ss:$8 sm:$0xf]  ;;  %v1348_v53 = vand.u32 127, %v52_v51 }
   0x5   :  { %v237_v14 = vrot.slane %v234_v9, 4  ;;  %v238_v16 = vrot.slane %v236_v12, 4  ;;  %s1215_s17 = smov 111   ;;  %v63_v54 = vperm.slane %v1346_v52, 2 }
   0x6   :  { %vm54_vm1 = vcmp.lt.s32.totalorder %v1348_v53, 17  ;;  %v1361_v58 = vld [vmem:[%s1725_s1 + $0x1] ss:$8 sm:$0xf]  ;;  %vm96_vm2 = vcmp.lt.s32.totalorder %v1348_v53, 16  ;;  %vm194_vm3 = vcmp.lt.s32.totalorder %v1348_v53, 1 }
   0x7   :  { %v240_v21 = vsel %vm239_vm0, %v233_v13, %v237_v14  ;;  %v241_v22 = vsel %vm239_vm0, %v235_v15, %v238_v16  ;;  %v1163_v60 = vld [vmem:[%s1725_s1 + $0x3] ss:$8 sm:$0xf]  ;;  %v106_v61 = vperm.slane %v1361_v58, 2  ;;  %vm151_vm4 = vcmp.lt.s32.totalorder %v1348_v53, 15 }
   0x8   :  { %v244_v23 = vmul.f32 %v240_v21, %v1265_v0  ;;  %v245_v24 = vmul.f32 %v241_v22, %v1270_v1  ;;  %v205_v62 = vperm.slane %v1163_v60, 3  ;;  %v1389_v13 = vld [vmem:[%s1725_s1 + $0x2] ss:$8 sm:$0xf]  ;;  %vm282_vm5 = vcmp.lt.s32.totalorder %v1348_v53, 127 }
   0x9   :  { %v37_v2 = vld.sshfl [vmem:[#allocation1 + $0x8] sm:$0xff pattern:$0x75316420]  ;;  %v1274_v3 = vld.sshfl [vmem:[#allocation1] sm:$0xff pattern:$0x75316420] }
   0xa   :  { %46 = vrot.lane.b32.xlu2 %v37_v2, %s1208_s9  ;;  %77 = vst [vmem:[#allocation1] ss:$2 sm:$0xff] %v1265_v0  ;;  %v38_v4 = vld.sshfl [vmem:[#allocation1 + $0x10] sm:$0xff pattern:$0x75316420]  ;;  %v162_v15 = vperm.slane %v1389_v13, 3 }
   0xb   :  { %v1278_v5 = vld.sshfl [vmem:[#allocation1 + $0x18] sm:$0xff pattern:$0x75316420]  ;;  %48 = vrot.lane.b32.xlu0 %v38_v4, %s1208_s9  ;;  %v161_v16 = vperm.slane %v1389_v13, 2  ;;  %vm380_vm6 = vcmp.lt.s32.totalorder %v1348_v53, 112  ;;  %vm337_vm7 = vcmp.lt.s32.totalorder %v1348_v53, 113 }
   0xc   :  { %79 = vst [vmem:[#allocation1 + $0x10] ss:$2 sm:$0xff] %v1270_v1  ;;  %vm435_vm8 = vcmp.lt.s32.totalorder %v1348_v53, 111 }
  0x11   :  { %v81_v7 = vld.sshfl [vmem:[#allocation1 + $0x8] sm:$0xff pattern:$0x75316420]  ;;  %v1285_v8 = vld.sshfl [vmem:[#allocation1] sm:$0xff pattern:$0x75316420] }
  0x12   :  { %90 = vrot.lane.b32.xlu1 %v81_v7, %s1209_s11  ;;  %132 = vst [vmem:[#allocation1] ss:$2 sm:$0xff] %v1265_v0  ;;  %v107_v7 = vperm.slane %v1361_v58, 3 }
  0x13   :  { %v82_v10 = vld.sshfl [vmem:[#allocation1 + $0x10] sm:$0xff pattern:$0x75316420]  ;;  %v83_v11 = vld.sshfl [vmem:[#allocation1 + $0x18] sm:$0xff pattern:$0x75316420] }
  0x14   :  { %92 = vrot.lane.b32.xlu2 %v82_v10, %s1209_s11  ;;  %134 = vst [vmem:[#allocation1 + $0x10] ss:$2 sm:$0xff] %v1270_v1 }
  0x19   :  { %v136_v17 = vld.sshfl [vmem:[#allocation1 + $0x8] sm:$0xff pattern:$0x75316420]  ;;  %v1291_v18 = vld.sshfl [vmem:[#allocation1] sm:$0xff pattern:$0x75316420] }
  0x1a   :  { %94 = vrot.lane.b32.xlu1 %v83_v11, %s1209_s11  ;;  %145 = vrot.lane.b32.xlu0 %v136_v17, %s1210_s12  ;;  %175 = vst [vmem:[#allocation1] ss:$2 sm:$0xff] %v1265_v0  ;;  %v202_v17 = vperm.slane %v1163_v60, 0 }
  0x1b   :  { %v137_v19 = vld.sshfl [vmem:[#allocation1 + $0x10] sm:$0xff pattern:$0x75316420]  ;;  %v138_v20 = vld.sshfl [vmem:[#allocation1 + $0x18] sm:$0xff pattern:$0x75316420] }
  0x1c   :  { %177 = vst [vmem:[#allocation1 + $0x10] ss:$2 sm:$0xff] %v1270_v1 }
  0x21   :  { %v179_v25 = vld.sshfl [vmem:[#allocation1 + $0x8] sm:$0xff pattern:$0x75316420]  ;;  %v178_v26 = vld.sshfl [vmem:[#allocation1] sm:$0xff pattern:$0x75316420] }
  0x22   :  { %147 = vrot.lane.b32.xlu1 %v137_v19, %s1210_s12  ;;  %186 = vrot.lane.b32.xlu0 %v178_v26, %s1211_s13  ;;  %248 = vst [vmem:[#allocation1] ss:$2 sm:$0xff] %v244_v23 }
  0x23   :  { %v180_v27 = vld.sshfl [vmem:[#allocation1 + $0x10] sm:$0xff pattern:$0x75316420]  ;;  %v181_v28 = vld.sshfl [vmem:[#allocation1 + $0x18] sm:$0xff pattern:$0x75316420] }
  0x24   :  { %190 = vrot.lane.b32.xlu2 %v180_v27, %s1211_s13  ;;  %250 = vst [vmem:[#allocation1 + $0x10] ss:$2 sm:$0xff] %v245_v24 }
  0x29   :  { %v251_v29 = vld.sshfl [vmem:[#allocation1] sm:$0xff pattern:$0x75316420]  ;;  %v252_v32 = vld.sshfl [vmem:[#allocation1 + $0x8] sm:$0xff pattern:$0x75316420] }
  0x2a   :  { %188 = vrot.lane.b32.xlu1 %v179_v25, %s1211_s13  ;;  %259 = vst [vmem:[#allocation2 + $0x8] sm:$0xf] %v251_v29  ;;  %v203_v29 = vperm.slane %v1163_v60, 1 }
  0x2b   :  { %v253_v30 = vld.sshfl [vmem:[#allocation1 + $0x10] sm:$0xff pattern:$0x75316420]  ;;  %v254_v31 = vld.sshfl [vmem:[#allocation1 + $0x18] sm:$0xff pattern:$0x75316420] }
  0x2c   :  { %192 = vrot.lane.b32.xlu2 %v181_v28, %s1211_s13  ;;  %261 = vst [vmem:[#allocation2 + $0x28] sm:$0xf] %v253_v30  ;;  %v204_v28 = vperm.slane %v1163_v60, 2  ;;  %v1165_v30 = vld [vmem:[%s1725_s1 + $0x5] ss:$8 sm:$0xf] }
  0x2d   :  { %262 = vst [vmem:[#allocation2 + $0x40] sm:$0xf] %v254_v31  ;;  %v292_v31 = vperm.slane %v1165_v30, 2  ;;  %v291_v60 = vperm.slane %v1165_v30, 1 }
  0x2e   :  { %265 = vst [vmem:[#allocation1 + $0x10] ss:$2 sm:$0xff] %v1270_v1 }
  0x2f   :  { %260 = vst [vmem:[#allocation2 + $0x88] sm:$0xf] %v252_v32 }
  0x30   :  { %263 = vst [vmem:[#allocation1] ss:$2 sm:$0xff] %v1265_v0 }
  0x34   :  { %149 = vrot.lane.b32.xlu2 %v138_v20, %s1210_s12 }
  0x35   :  { %v268_v33 = vld.sshfl [vmem:[#allocation1 + $0x10] sm:$0xff pattern:$0x75316420]  ;;  %v269_v34 = vld.sshfl [vmem:[#allocation1 + $0x18] sm:$0xff pattern:$0x75316420] }
  0x36   :  { %320 = vst [vmem:[#allocation1 + $0x10] ss:$2 sm:$0xff] %v1270_v1 }
  0x37   :  { %v266_v35 = vld.sshfl [vmem:[#allocation1] sm:$0xff pattern:$0x75316420]  ;;  %v267_v36 = vld.sshfl [vmem:[#allocation1 + $0x8] sm:$0xff pattern:$0x75316420] }
  0x38   :  { %274 = vrot.lane.b32.xlu0 %v266_v35, %s1212_s14  ;;  %318 = vst [vmem:[#allocation1] ss:$2 sm:$0xff] %v1265_v0 }
  0x3c   :  { %278 = vrot.lane.b32.xlu2 %v268_v33, %s1212_s14 }
  0x3d   :  { %v324_v37 = vld.sshfl [vmem:[#allocation1 + $0x18] sm:$0xff pattern:$0x75316420]  ;;  %v323_v38 = vld.sshfl [vmem:[#allocation1 + $0x10] sm:$0xff pattern:$0x75316420] }
  0x3e   :  { %335 = vrot.lane.b32.xlu1 %v324_v37, %s1213_s15  ;;  %363 = vst [vmem:[#allocation1 + $0x10] ss:$2 sm:$0xff] %v1270_v1 }
  0x3f   :  { %v321_v39 = vld.sshfl [vmem:[#allocation1] sm:$0xff pattern:$0x75316420]  ;;  %v322_v40 = vld.sshfl [vmem:[#allocation1 + $0x8] sm:$0xff pattern:$0x75316420] }
  0x40   :  { %276 = vrot.lane.b32.xlu0 %v267_v36, %s1212_s14  ;;  %361 = vst [vmem:[#allocation1] ss:$2 sm:$0xff] %v1265_v0 }
  0x44   :  { %280 = vrot.lane.b32.xlu2 %v269_v34, %s1212_s14 }
  0x45   :  { %v366_v41 = vld.sshfl [vmem:[#allocation1 + $0x10] sm:$0xff pattern:$0x75316420]  ;;  %v367_v42 = vld.sshfl [vmem:[#allocation1 + $0x18] sm:$0xff pattern:$0x75316420] }
  0x46   :  { %329 = vrot.lane.b32.xlu1 %v321_v39, %s1213_s15  ;;  %418 = vst [vmem:[#allocation1 + $0x10] ss:$2 sm:$0xff] %v1270_v1 }
  0x47   :  { %v364_v43 = vld.sshfl [vmem:[#allocation1] sm:$0xff pattern:$0x75316420]  ;;  %v365_v44 = vld.sshfl [vmem:[#allocation1 + $0x8] sm:$0xff pattern:$0x75316420] }
  0x48   :  { %333 = vrot.lane.b32.xlu0 %v323_v38, %s1213_s15  ;;  %416 = vst [vmem:[#allocation1] ss:$2 sm:$0xff] %v1265_v0 }
  0x4c   :  { %372 = vrot.lane.b32.xlu2 %v364_v43, %s1214_s16 }
  0x4d   :  { %v421_v45 = vld.sshfl [vmem:[#allocation1 + $0x10] sm:$0xff pattern:$0x75316420]  ;;  %v422_v46 = vld.sshfl [vmem:[#allocation1 + $0x18] sm:$0xff pattern:$0x75316420] }
  0x4e   :  { %331 = vrot.lane.b32.xlu1 %v322_v40, %s1213_s15  ;;  %1128 = vst [vmem:[#allocation1 + $0x10] ss:$2 sm:$0xff] %v1270_v1 }
  0x4f   :  { %v419_v47 = vld.sshfl [vmem:[#allocation1] sm:$0xff pattern:$0x75316420]  ;;  %v420_v48 = vld.sshfl [vmem:[#allocation1 + $0x8] sm:$0xff pattern:$0x75316420] }
  0x50   :  { %376 = vrot.lane.b32.xlu0 %v366_v41, %s1214_s16  ;;  %1126 = vst [vmem:[#allocation1] ss:$2 sm:$0xff] %v1265_v0 }
  0x54   :  { %374 = vrot.lane.b32.xlu2 %v365_v44, %s1214_s16  ;;  %v293_v44 = vperm.slane %v1165_v30, 3 }
  0x56   :  { %431 = vrot.lane.b32.xlu1 %v421_v45, %s1215_s17  ;;  %v1417_v45 = vld [vmem:[%s1725_s1 + $0x7] ss:$8 sm:$0xf] }
  0x58   :  { %378 = vrot.lane.b32.xlu0 %v367_v42, %s1214_s16 }
  0x5c   :  { %88 = vrot.lane.b32.xlu2 %v1285_v8, %s1209_s11 }
  0x5e   :  { %433 = vrot.lane.b32.xlu1 %v422_v46, %s1215_s17 }
  0x60   :  { %427 = vrot.lane.b32.xlu0 %v419_v47, %s1215_s17 }
  0x64   :  { %v1337_v49 = vpop.permute.xlu2 %46 }
  0x66   :  { %50 = vrot.lane.b32.xlu1 %v1278_v5, %s1208_s9 }
  0x68   :  { %429 = vrot.lane.b32.xlu0 %v420_v48, %s1215_s17 }
  0x6e   :  { %44 = vrot.lane.b32.xlu1 %v1274_v3, %s1208_s9  ;;  %v93_v50 = vpop.permute.xlu2 %92 }
  0x70   :  { %143 = vrot.lane.b32.xlu0 %v1291_v18, %s1210_s12 }
  0x7d   :  { %v1352_v55 = vpop.permute.xlu0 %48 }
  0x7e   :  { %v191_v56 = vpop.permute.xlu2 %190  ;;  %v56_v57 = vsel %vm54_vm1, %v1337_v49, %v1352_v55 }
  0x7f   :  { %v71_v59 = vmul.f32 %v63_v54, %v56_v57 }
  0x81   :  { %75 = vst [vmem:[#allocation2 + $0x50] sm:$0xf] %v71_v59  ;;  %v290_v59 = vperm.slane %v1165_v30, 0 }
  0x84   :  { %v1369_v63 = vpop.permute.xlu1 %90 }
  0x85   :  { %v98_v0 = vsel %vm96_vm2, %v1369_v63, %v93_v50 }
  0x86   :  { %v193_v1 = vpop.permute.xlu2 %192  ;;  %v114_v2 = vmul.f32 %v106_v61, %v98_v0 }
  0x87   :  { %v195_v3 = vsel %vm194_vm3, %v191_v56, %v193_v1 }
  0x88   :  { %v213_v4 = vmul.f32 %v205_v62, %v195_v3  ;;  %v122_v5 = vrot.slane %v114_v2, 4  ;;  %v1166_v3 = vld [vmem:[%s1725_s1 + $0x6] ss:$8 sm:$0xf] }
  0x8a   :  { %v221_v6 = vrot.slane %v213_v4, 4  ;;  %130 = vst [vmem:[#allocation2 + $0x50] sm:$0xf0] %v122_v5 }
  0x8c   :  { %229 = vst [vmem:[#allocation2 + $0x80] sm:$0xf0] %v221_v6  ;;  %v1377_v8 = vpop.permute.xlu1 %94  ;;  %v1379_v9 = vpop.permute.xlu0 %145  ;;  %v104_v6 = vperm.slane %v1361_v58, 0 }
  0x8d   :  { %v97_v10 = vsel %vm96_vm2, %v93_v50, %v1377_v8  ;;  %v388_v50 = vperm.slane %v1417_v45, 0 }
  0x8e   :  { %v1384_v11 = vpop.permute.xlu2 %149  ;;  %v115_v12 = vmul.f32 %v107_v7, %v97_v10  ;;  %v105_v7 = vperm.slane %v1361_v58, 1 }
  0x90   :  { %v123_v14 = vrot.slane %v115_v12, 4 }
  0x92   :  { %131 = vst [vmem:[#allocation2 + $0x18] sm:$0xf0] %v123_v14  ;;  %v348_v14 = vperm.slane %v1166_v3, 3 }
  0x94   :  { %v148_v18 = vpop.permute.xlu1 %147  ;;  %v187_v19 = vpop.permute.xlu0 %186 }
  0x95   :  { %v152_v20 = vsel %vm151_vm4, %v148_v18, %v1384_v11  ;;  %v153_v21 = vsel %vm151_vm4, %v1379_v9, %v148_v18  ;;  %v198_v22 = vsel %vm194_vm3, %v193_v1, %v187_v19  ;;  %v347_v18 = vperm.slane %v1166_v3, 2 }
  0x96   :  { %v279_v23 = vpop.permute.xlu2 %278  ;;  %v170_v24 = vmul.f32 %v162_v15, %v152_v20  ;;  %v169_v25 = vmul.f32 %v161_v16, %v153_v21  ;;  %v210_v26 = vmul.f32 %v202_v17, %v198_v22 }
  0x98   :  { %174 = vst [vmem:[#allocation2 + $0x80] sm:$0xf] %v170_v24  ;;  %v218_v27 = vrot.slane %v210_v26, 4 }
  0x99   :  { %173 = vst [vmem:[#allocation2 + $0x78] sm:$0xf] %v169_v25 }
  0x9a   :  { %226 = vst [vmem:[#allocation2 + $0x30] sm:$0xf0] %v218_v27  ;;  %v346_v27 = vperm.slane %v1166_v3, 1 }
  0x9c   :  { %v189_v32 = vpop.permute.xlu1 %188 }
  0x9d   :  { %v196_v33 = vsel %vm194_vm3, %v189_v32, %v191_v56  ;;  %v197_v34 = vsel %vm194_vm3, %v187_v19, %v189_v32 }
  0x9e   :  { %v281_v35 = vpop.permute.xlu2 %280  ;;  %v212_v36 = vmul.f32 %v204_v28, %v196_v33  ;;  %v211_v37 = vmul.f32 %v203_v29, %v197_v34  ;;  %v389_v28 = vperm.slane %v1417_v45, 1 }
  0x9f   :  { %v283_v38 = vsel %vm282_vm5, %v279_v23, %v281_v35 }
  0xa0   :  { %v300_v39 = vmul.f32 %v292_v31, %v283_v38  ;;  %v220_v40 = vrot.slane %v212_v36, 4  ;;  %v219_v41 = vrot.slane %v211_v37, 4  ;;  %v390_v38 = vperm.slane %v1417_v45, 2 }
  0xa2   :  { %v308_v42 = vrot.slane %v300_v39, 4  ;;  %228 = vst [vmem:[#allocation2 + $0x78] sm:$0xf0] %v220_v40  ;;  %v391_v39 = vperm.slane %v1417_v45, 3 }
  0xa3   :  { %227 = vst [vmem:[#allocation2 + $0x68] sm:$0xf0] %v219_v41 }
  0xa4   :  { %316 = vst [vmem:[#allocation2 + $0x28] sm:$0xf0] %v308_v42 }
  0xa6   :  { %v1412_v43 = vpop.permute.xlu2 %372 }
  0xaa   :  { %v275_v46 = vpop.permute.xlu0 %274 }
  0xab   :  { %v286_v47 = vsel %vm282_vm5, %v281_v35, %v275_v46 }
  0xac   :  { %v301_v48 = vmul.f32 %v293_v44, %v286_v47 }
  0xae   :  { %v309_v51 = vrot.slane %v301_v48, 4  ;;  %v375_v54 = vpop.permute.xlu2 %374 }
  0xaf   :  { %v383_v56 = vsel %vm380_vm6, %v1412_v43, %v375_v54 }
  0xb0   :  { %317 = vst [vmem:[#allocation2 + $0x40] sm:$0xf0] %v309_v51  ;;  %v336_v57 = vpop.permute.xlu1 %335  ;;  %v396_v61 = vmul.f32 %v388_v50, %v383_v56 }
  0xb2   :  { %v277_v62 = vpop.permute.xlu0 %276  ;;  %v404_v0 = vrot.slane %v396_v61, 4 }
  0xb3   :  { %v284_v1 = vsel %vm282_vm5, %v277_v62, %v279_v23  ;;  %v285_v2 = vsel %vm282_vm5, %v275_v46, %v277_v62  ;;  %v1168_v46 = vld [vmem:[%s1725_s1 + $0x20] ss:$8 sm:$0xf]  ;;  %v64_v62 = vperm.slane %v1346_v52, 3 }
  0xb4   :  { %v298_v4 = vmul.f32 %v290_v59, %v285_v2  ;;  %v299_v5 = vmul.f32 %v291_v60, %v284_v1  ;;  %412 = vst [vmem:[#allocation2 + $0x58] sm:$0xf0] %v404_v0  ;;  %v445_v45 = vperm.slane %v1168_v46, 2  ;;  %v446_v56 = vperm.slane %v1168_v46, 3 }
  0xb5   :  { %v443_v1 = vperm.slane %v1168_v46, 0  ;;  %v444_v2 = vperm.slane %v1168_v46, 1 }
  0xb6   :  { %v306_v10 = vrot.slane %v298_v4, 4  ;;  %v307_v12 = vrot.slane %v299_v5, 4  ;;  %v89_v15 = vpop.permute.xlu2 %88 }
  0xb7   :  { %v99_v16 = vsel %vm96_vm2, %v89_v15, %v1369_v63  ;;  %v100_v17 = vsel %vm96_vm2, %v1377_v8, %v89_v15  ;;  %v345_v8 = vperm.slane %v1166_v3, 0 }
  0xb8   :  { %314 = vst [vmem:[#allocation2 + $0x8] sm:$0xf0] %v306_v10  ;;  %v330_v19 = vpop.permute.xlu1 %329  ;;  %v112_v20 = vmul.f32 %v104_v6, %v100_v17  ;;  %v113_v21 = vmul.f32 %v105_v7, %v99_v16  ;;  %v62_v17 = vperm.slane %v1346_v52, 1 }
  0xb9   :  { %315 = vst [vmem:[#allocation2 + $0x88] sm:$0xf0] %v307_v12  ;;  %v341_v58 = vsel %vm337_vm7, %v336_v57, %v330_v19 }
  0xba   :  { %v334_v22 = vpop.permute.xlu0 %333  ;;  %v356_v23 = vmul.f32 %v348_v14, %v341_v58  ;;  %v120_v24 = vrot.slane %v112_v20, 4  ;;  %v121_v63 = vrot.slane %v113_v21, 4  ;;  %v159_v21 = vperm.slane %v1389_v13, 0 }
  0xbb   :  { %v338_v25 = vsel %vm337_vm7, %v334_v22, %v336_v57  ;;  %v160_v58 = vperm.slane %v1389_v13, 1 }
  0xbc   :  { %v355_v26 = vmul.f32 %v347_v18, %v338_v25  ;;  %360 = vst [vmem:[#allocation2 + $0x60] sm:$0xf] %v356_v23  ;;  %v466_v25 = vld [vmem:[#allocation2 + $0x78] sm:$0xff] }
  0xbd   :  { %128 = vst [vmem:[#allocation2] sm:$0xf0] %v120_v24  ;;  %v471_v24 = vld [vmem:[#allocation2 + $0x40] sm:$0xff] }
  0xbe   :  { %359 = vst [vmem:[#allocation2 + $0x98] sm:$0xf] %v355_v26 }
  0xbf   :  { %129 = vst [vmem:[#allocation2 + $0x38] sm:$0xf0] %v121_v63 }
  0xc0   :  { %v332_v29 = vpop.permute.xlu1 %331 }
  0xc1   :  { %v339_v30 = vsel %vm337_vm7, %v332_v29, %v334_v22  ;;  %v340_v31 = vsel %vm337_vm7, %v330_v19, %v332_v29  ;;  %v470_v19 = vld [vmem:[#allocation2 + $0x28] sm:$0xff] }
  0xc2   :  { %v377_v32 = vpop.permute.xlu0 %376  ;;  %v353_v33 = vmul.f32 %v345_v8, %v340_v31  ;;  %v354_v34 = vmul.f32 %v346_v27, %v339_v30  ;;  %v459_v8 = vld [vmem:[%s1726_s2] sm:$0xf]  ;;  %v467_v27 = vld [vmem:[#allocation2 + $0x80] sm:$0xff] }
  0xc3   :  { %v382_v35 = vsel %vm380_vm6, %v375_v54, %v377_v32 }
  0xc4   :  { %v397_v36 = vmul.f32 %v389_v28, %v382_v35  ;;  %357 = vst [vmem:[#allocation2 + $0x58] sm:$0xf] %v353_v33  ;;  %v462_v28 = vld [vmem:[#allocation2 + $0x50] sm:$0xff]  ;;  %v469_v35 = vld [vmem:[#allocation2 + $0x88] sm:$0xff] }
  0xc5   :  { %358 = vst [vmem:[#allocation2 + $0x10] sm:$0xf] %v354_v34  ;;  %v468_v34 = vld [vmem:[#allocation2 + $0x8] sm:$0xff] }
  0xc6   :  { %v405_v37 = vrot.slane %v397_v36, 4 }
  0xc8   :  { %413 = vst [vmem:[#allocation2 + $0x10] sm:$0xf0] %v405_v37  ;;  %v432_v40 = vpop.permute.xlu1 %431 }
  0xca   :  { %v379_v41 = vpop.permute.xlu0 %378 }
  0xcb   :  { %v381_v42 = vsel %vm380_vm6, %v377_v32, %v379_v41  ;;  %v384_v44 = vsel %vm380_vm6, %v379_v41, %v1412_v43 }
  0xcc   :  { %v398_v47 = vmul.f32 %v390_v38, %v381_v42  ;;  %v399_v48 = vmul.f32 %v391_v39, %v384_v44 }
  0xce   :  { %v406_v50 = vrot.slane %v398_v47, 4  ;;  %v407_v51 = vrot.slane %v399_v48, 4 }
  0xcf   :  { %v473_v33 = vld [vmem:[#allocation2 + $0x10] sm:$0xff] }
  0xd0   :  { %414 = vst [vmem:[#allocation2 + $0x98] sm:$0xf0] %v406_v50  ;;  %v434_v54 = vpop.permute.xlu1 %433 }
  0xd1   :  { %415 = vst [vmem:[#allocation2 + $0x60] sm:$0xf0] %v407_v51  ;;  %v436_v57 = vsel %vm435_vm8, %v432_v40, %v434_v54 }
  0xd2   :  { %v453_v59 = vmul.f32 %v445_v45, %v436_v57  ;;  %v428_v43 = vpop.permute.xlu0 %427 }
  0xd3   :  { %v439_v60 = vsel %vm435_vm8, %v434_v54, %v428_v43 }
  0xd4   :  { %457 = vst [vmem:[#allocation2 + $0x70] sm:$0xf] %v453_v59  ;;  %v454_v61 = vmul.f32 %v446_v56, %v439_v60 }
  0xd6   :  { %458 = vst [vmem:[#allocation2 + $0x90] sm:$0xf] %v454_v61 }
  0xd7   :  { %v474_v16 = vld [vmem:[#allocation2 + $0x98] sm:$0xff] }
  0xd8   :  { %v51_v0 = vpop.permute.xlu1 %50  ;;  %v475_v18 = vld [vmem:[#allocation2 + $0x60] sm:$0xff] }
  0xd9   :  { %v55_v3 = vsel %vm54_vm1, %v1352_v55, %v51_v0  ;;  %v61_v55 = vperm.slane %v1346_v52, 0 }
  0xda   :  { %v72_v4 = vmul.f32 %v64_v62, %v55_v3  ;;  %v430_v5 = vpop.permute.xlu0 %429 }
  0xdb   :  { %v437_v6 = vsel %vm435_vm8, %v430_v5, %v432_v40  ;;  %v438_v7 = vsel %vm435_vm8, %v428_v43, %v430_v5  ;;  %v478_v10 = vld [vmem:[#allocation2 + $0x70] sm:$0xf]  ;;  %v628_v5 = vld [vmem:[%s1727_s4] sm:$0xf] }
  0xdc   :  { %76 = vst [vmem:[#allocation2 + $0x18] sm:$0xf] %v72_v4  ;;  %v451_v12 = vmul.f32 %v443_v1, %v438_v7  ;;  %v452_v14 = vmul.f32 %v444_v2, %v437_v6  ;;  %1173 = vmatpush.msk.msra.mxu2 %vm239_vm0, %v478_v10  ;;  %v1216_v4 = vmov 0  }
  0xdd   :  { %v479_v15 = vld [vmem:[#allocation2 + $0x90] sm:$0xf]  ;;  %1202 = vset.pattern.permute.xlu1 %v1216_v4  ;;  %1203 = vset.pattern.permute.xlu0 %v1216_v4 }
  0xde   :  { %455 = vst [vmem:[#allocation2 + $0x20] sm:$0xf] %v451_v12  ;;  %1175 = vmatpush.msk.msra.mxu3 %vm239_vm0, %v479_v15  ;;  %548 = vmatpush.msra.mxu2 %v474_v16 }
  0xdf   :  { %456 = vst [vmem:[#allocation2 + $0x48] sm:$0xf] %v452_v14  ;;  %631 = vperm.xlu1 %1202, %v628_v5  }
  0xe0   :  { %568 = vmatpush.msra.mxu3 %v475_v18  ;;  %549 = vmatpush.msra.mxu2 %v470_v19  ;;  %v45_v20 = vpop.permute.xlu1 %44 }
  0xe1   :  { %v57_v22 = vsel %vm54_vm1, %v45_v20, %v1337_v49  ;;  %v58_v23 = vsel %vm54_vm1, %v51_v0, %v45_v20 }
  0xe2   :  { %v69_v52 = vmul.f32 %v61_v55, %v58_v23  ;;  %v70_v63 = vmul.f32 %v62_v17, %v57_v22  ;;  %569 = vmatpush.msra.mxu3 %v471_v24  ;;  %v144_v26 = vpop.permute.xlu0 %143  ;;  %550 = vmatpush.msra.mxu2 %v466_v25 }
  0xe3   :  { %v154_v13 = vsel %vm151_vm4, %v144_v26, %v1379_v9  ;;  %v155_v49 = vsel %vm151_vm4, %v1384_v11, %v144_v26  ;;  %v463_v29 = vld [vmem:[#allocation2 + $0x18] sm:$0xff] }
  0xe4   :  { %73 = vst [vmem:[#allocation2] sm:$0xf] %v69_v52  ;;  %v167_v30 = vmul.f32 %v159_v21, %v155_v49  ;;  %v168_v31 = vmul.f32 %v160_v58, %v154_v13  ;;  %570 = vmatpush.msra.mxu3 %v467_v27  ;;  %551 = vmatpush.msra.mxu2 %v462_v28  ;;  %v472_v11 = vld [vmem:[#allocation2 + $0x58] sm:$0xff] }
  0xe5   :  { %74 = vst [vmem:[#allocation2 + $0x38] sm:$0xf] %v70_v63  ;;  %v476_v32 = vld [vmem:[#allocation2 + $0x20] sm:$0xf]  ;;  %1174 = vmatmul.msk.f32.vlgmr.msra.gmra.mxu2 %vm480_vm9, %v459_v8  ;;  %v613_v58 = vld [vmem:[%s1728_s3] sm:$0xf] }
  0xe6   :  { %171 = vst [vmem:[#allocation2 + $0x30] sm:$0xf] %v167_v30  ;;  %1169 = vmatpush.msk.msra.mxu0 %vm239_vm0, %v476_v32  ;;  %v477_v9 = vld [vmem:[#allocation2 + $0x48] sm:$0xf]  ;;  %571 = vmatpush.msra.mxu3 %v463_v29 }
  0xe7   :  { %172 = vst [vmem:[#allocation2 + $0x68] sm:$0xf] %v168_v31  ;;  %1171 = vmatpush.msk.msra.mxu1 %vm239_vm0, %v477_v9  ;;  %1176 = vmatmul.msk.f32.vlgmr.msra.gmra.mxu3 %vm480_vm9, %v459_v8 }
  0xe8   :  { %508 = vmatpush.msra.mxu0 %v472_v11 }
  0xe9   :  { %528 = vmatpush.msra.mxu1 %v473_v33 }
  0xea   :  { %509 = vmatpush.msra.mxu0 %v468_v34 }
  0xeb   :  { %529 = vmatpush.msra.mxu1 %v469_v35  ;;  %v460_v38 = vld [vmem:[#allocation2] sm:$0xff] }
  0xec   :  { %v461_v39 = vld [vmem:[#allocation2 + $0x38] sm:$0xff] }
  0xed   :  { %v464_v36 = vld [vmem:[#allocation2 + $0x30] sm:$0xff] }
  0xee   :  { %510 = vmatpush.msra.mxu0 %v464_v36  ;;  %v465_v37 = vld [vmem:[#allocation2 + $0x68] sm:$0xff] }
  0xef   :  { %530 = vmatpush.msra.mxu1 %v465_v37 }
  0xf0   :  { %511 = vmatpush.msra.mxu0 %v460_v38 }
  0xf1   :  { %531 = vmatpush.msra.mxu1 %v461_v39  ;;  %1170 = vmatmul.msk.f32.vlgmr.msra.gmra.mxu0 %vm480_vm9, %v459_v8 }
  0xf2   :  { %1172 = vmatmul.msk.f32.vlgmr.msra.gmra.mxu1 %vm480_vm9, %v459_v8  ;;  %v1180_v8 = vld [vmem:[%s1725_s1 + $0x4] ss:$8 sm:$0xf] }
  0xf3   :  { %v790_v30 = vperm.slane %v1180_v8, 2  ;;  %v791_v31 = vperm.slane %v1180_v8, 3  ;;  %v788_v32 = vperm.slane %v1180_v8, 0  ;;  %v789_v35 = vperm.slane %v1180_v8, 1 }
 0x151   :  { %v632_v24 = vpop.permute.xlu1 %631 }
 0x168   :  { %v553_v40 = vpop.f32.mrf.mxu2 }
 0x169   :  { %v588_v44 = vmul.f32 %v553_v40, %v553_v40  ;;  %v579_v45 = vsel %vm239_vm0, %v553_v40, 0.0 }
 0x16a   :  { %v573_v41 = vpop.f32.mrf.mxu3 }
 0x16b   :  { %v589_v54 = vmul.f32 %v573_v41, %v573_v41  ;;  %v581_v43 = vsel %vm239_vm0, %v573_v41, 0.0  ;;  %v593_v60 = vsel %vm239_vm0, %v588_v44, 0.0 }
 0x16d   :  { %v595_v0 = vsel %vm239_vm0, %v589_v54, 0.0 }
 0x16e   :  { %v513_v42 = vpop.f32.mrf.mxu0 }
 0x16f   :  { %v576_v46 = vsel %vm239_vm0, %v513_v42, 0.0  ;;  %v586_v47 = vmul.f32 %v513_v42, %v513_v42  ;;  %v533_v48 = vpop.f32.mrf.mxu1 }
 0x170   :  { %v577_v50 = vsel %vm239_vm0, %v533_v48, 0.0  ;;  %v587_v51 = vmul.f32 %v533_v48, %v533_v48 }
 0x171   :  { %v590_v56 = vsel %vm239_vm0, %v586_v47, 0.0  ;;  %v578_v57 = vadd.f32 %v577_v50, %v576_v46  ;;  %v1183_v50 = vld [vmem:[%s1725_s1 + $0x7] ss:$8 sm:$0xf] }
 0x172   :  { %v591_v59 = vsel %vm239_vm0, %v587_v51, 0.0  ;;  %v890_v51 = vperm.slane %v1183_v50, 0  ;;  %v893_v4 = vperm.slane %v1183_v50, 3 }
 0x173   :  { %v580_v61 = vadd.f32 %v579_v45, %v578_v57  ;;  %v592_v62 = vadd.f32 %v591_v59, %v590_v56  ;;  %v891_v45 = vperm.slane %v1183_v50, 1 }
 0x175   :  { %v582_v1 = vadd.f32 %v581_v43, %v580_v61  ;;  %v594_v2 = vadd.f32 %v593_v60, %v592_v62  ;;  %v1184_v62 = vld [vmem:[%s1725_s1 + $0x20] ss:$8 sm:$0xf] }
 0x177   :  { %583 = vadd.xlane.f32.xlu2 %v582_v1  ;;  %v596_v3 = vadd.f32 %v595_v0, %v594_v2  ;;  %v935_v2 = vperm.slane %v1184_v62, 3 }
 0x179   :  { %597 = vadd.xlane.f32.xlu0 %v596_v3  ;;  %v892_v3 = vperm.slane %v1183_v50, 2 }
 0x1ea   :  { %v584_v6 = vpop.xlane.xlu2 %583 }
 0x1eb   :  { %v585_v7 = vmul.f32 0.001953125, %v584_v6 }
 0x1ec   :  { %v598_v10 = vpop.xlane.xlu0 %597 }
 0x1ed   :  { %v599_v12 = vmul.f32 0.001953125, %v598_v10  ;;  %v600_v14 = vmul.f32 %v585_v7, %v585_v7  ;;  %v615_v25 = vsub.f32 %v513_v42, %v585_v7  ;;  %v616_v52 = vsub.f32 %v533_v48, %v585_v7 }
 0x1ee   :  { %v617_v63 = vsub.f32 %v553_v40, %v585_v7  ;;  %v618_v26 = vsub.f32 %v573_v41, %v585_v7 }
 0x1ef   :  { %v601_v15 = vsub.f32 %v599_v12, %v600_v14 }
 0x1f1   :  { %v602_v16 = vadd.f32 1e-05, %v601_v15 }
 0x1f3   :  { %1204 = vrsqrt.f32 %v602_v16  ;;  %vm609_vm11 = vweird.f32 %v602_v16 }
 0x1f9   :  { %v1205_v55 = vpop.eup %1204 }
 0x1fa   :  { %v604_v17 = vmul.f32 %v1205_v55, %v602_v16  ;;  %vm610_vm10 = vweird.f32 %v1205_v55 }
 0x1fb   :  { %vm611_vm12 = vmor %vm609_vm11, %vm610_vm10 }
 0x1fc   :  { %v605_v18 = vmul.f32 %v1205_v55, %v604_v17  ;;  %v1181_v17 = vld [vmem:[%s1725_s1 + $0x5] ss:$8 sm:$0xf] }
 0x1fd   :  { %v818_v50 = vperm.slane %v1181_v17, 0 }
 0x1fe   :  { %v606_v19 = vmul.f32 0.5, %v605_v18  ;;  %v1577_v18 = vld [vmem:[%s1725_s1 + $0x3] ss:$8 sm:$0xf] }
 0x200   :  { %v607_v20 = vsub.f32 1.5, %v606_v19 }
 0x202   :  { %v608_v21 = vmul.f32 %v1205_v55, %v607_v20 }
 0x204   :  { %v612_v22 = vsel %vm611_vm12, %v1205_v55, %v608_v21  ;;  %v821_v21 = vperm.slane %v1181_v17, 3 }
 0x205   :  { %v614_v23 = vmul.f32 %v613_v58, %v612_v22  ;;  %v761_v58 = vperm.slane %v1577_v18, 3  ;;  %v934_v22 = vperm.slane %v1184_v62, 2 }
 0x207   :  { %621 = vperm.xlu1 %1202, %v614_v23  }
 0x279   :  { %v622_v13 = vpop.permute.xlu1 %621 }
 0x27a   :  { %v624_v49 = vmul.f32 %v622_v13, %v615_v25  ;;  %v625_v27 = vmul.f32 %v622_v13, %v616_v52  ;;  %v626_v28 = vmul.f32 %v622_v13, %v617_v63  ;;  %v627_v29 = vmul.f32 %v622_v13, %v618_v26 }
 0x27c   :  { %v634_v9 = vadd.f32 %v632_v24, %v624_v49  ;;  %v635_v11 = vadd.f32 %v632_v24, %v625_v27  ;;  %v636_v33 = vadd.f32 %v632_v24, %v626_v28  ;;  %v637_v34 = vadd.f32 %v632_v24, %v627_v29 }
 0x27e   :  { %v638_v36 = vmax.f32 %v634_v9, 0.0  ;;  %v639_v37 = vmax.f32 %v635_v11, 0.0  ;;  %v640_v38 = vmax.f32 %v636_v33, 0.0  ;;  %v641_v39 = vmax.f32 %v637_v34, 0.0 }
 0x280   :  { %810 = vrot.lane.b32.xlu0 %v641_v39, %s1212_s14  ;;  %924 = vrot.lane.b32.xlu2 %v641_v39, %s1215_s17  ;;  %v798_v40 = vmul.f32 %v790_v30, %v640_v38  ;;  %v799_v41 = vmul.f32 %v791_v31, %v641_v39  ;;  %v796_v42 = vmul.f32 %v788_v32, %v638_v36  ;;  %v932_v30 = vperm.slane %v1184_v62, 0 }
 0x281   :  { %880 = vrot.lane.b32.xlu1 %v640_v38, %s1214_s16  ;;  %v797_v44 = vmul.f32 %v789_v35, %v639_v37  ;;  %v933_v31 = vperm.slane %v1184_v62, 1  ;;  %v820_v32 = vperm.slane %v1181_v17, 2 }
 0x282   :  { %802 = vst [vmem:[#allocation2 + $0x28] sm:$0xf] %v798_v40 }
 0x283   :  { %803 = vst [vmem:[#allocation2 + $0x40] sm:$0xf] %v799_v41 }
 0x284   :  { %800 = vst [vmem:[#allocation2 + $0x8] sm:$0xf] %v796_v42 }
 0x285   :  { %801 = vst [vmem:[#allocation2 + $0x88] sm:$0xf] %v797_v44 }
 0x288   :  { %918 = vrot.lane.b32.xlu0 %v638_v36, %s1215_s17  ;;  %876 = vrot.lane.b32.xlu2 %v638_v36, %s1214_s16 }
 0x289   :  { %882 = vrot.lane.b32.xlu1 %v641_v39, %s1214_s16 }
 0x290   :  { %804 = vrot.lane.b32.xlu0 %v638_v36, %s1212_s14  ;;  %748 = vrot.lane.b32.xlu2 %v640_v38, %s1211_s13 }
 0x291   :  { %922 = vrot.lane.b32.xlu1 %v640_v38, %s1215_s17 }
 0x298   :  { %920 = vrot.lane.b32.xlu0 %v639_v37, %s1215_s17  ;;  %878 = vrot.lane.b32.xlu2 %v639_v37, %s1214_s16 }
 0x299   :  { %808 = vrot.lane.b32.xlu1 %v640_v38, %s1212_s14 }
 0x2a0   :  { %716 = vrot.lane.b32.xlu0 %v639_v37, %s1210_s12  ;;  %676 = vrot.lane.b32.xlu2 %v640_v38, %s1209_s11 }
 0x2a1   :  { %850 = vrot.lane.b32.xlu1 %v640_v38, %s1213_s15 }
 0x2a8   :  { %806 = vrot.lane.b32.xlu0 %v639_v37, %s1212_s14  ;;  %750 = vrot.lane.b32.xlu2 %v641_v39, %s1211_s13 }
 0x2a9   :  { %852 = vrot.lane.b32.xlu1 %v641_v39, %s1213_s15 }
 0x2b0   :  { %646 = vrot.lane.b32.xlu0 %v640_v38, %s1208_s9  ;;  %644 = vrot.lane.b32.xlu2 %v639_v37, %s1208_s9 }
 0x2b1   :  { %746 = vrot.lane.b32.xlu1 %v639_v37, %s1211_s13 }
 0x2b8   :  { %744 = vrot.lane.b32.xlu0 %v638_v36, %s1211_s13  ;;  %720 = vrot.lane.b32.xlu2 %v641_v39, %s1210_s12 }
 0x2b9   :  { %846 = vrot.lane.b32.xlu1 %v638_v36, %s1213_s15 }
 0x2c0   :  { %714 = vrot.lane.b32.xlu0 %v638_v36, %s1210_s12  ;;  %672 = vrot.lane.b32.xlu2 %v638_v36, %s1209_s11 }
 0x2c1   :  { %674 = vrot.lane.b32.xlu1 %v639_v37, %s1209_s11 }
 0x2c9   :  { %718 = vrot.lane.b32.xlu1 %v640_v38, %s1210_s12 }
 0x2d1   :  { %848 = vrot.lane.b32.xlu1 %v639_v37, %s1213_s15 }
 0x2d9   :  { %678 = vrot.lane.b32.xlu1 %v641_v39, %s1209_s11 }
 0x2da   :  { %v925_v46 = vpop.permute.xlu2 %924 }
 0x2e1   :  { %648 = vrot.lane.b32.xlu1 %v641_v39, %s1208_s9 }
 0x2e2   :  { %v877_v47 = vpop.permute.xlu2 %876 }
 0x2e9   :  { %642 = vrot.lane.b32.xlu1 %v638_v36, %s1208_s9 }
 0x2ea   :  { %v1551_v48 = vpop.permute.xlu2 %748 }
 0x2f2   :  { %v811_v54 = vpop.permute.xlu0 %810  ;;  %v879_v56 = vpop.permute.xlu2 %878 }
 0x2f3   :  { %v881_v57 = vpop.permute.xlu1 %880  ;;  %v886_v59 = vsel %vm380_vm6, %v877_v47, %v879_v56 }
 0x2f4   :  { %v885_v43 = vsel %vm380_vm6, %v879_v56, %v881_v57  ;;  %v898_v60 = vmul.f32 %v890_v51, %v886_v59  ;;  %v819_v51 = vperm.slane %v1181_v17, 1 }
 0x2f5   :  { %v899_v61 = vmul.f32 %v891_v45, %v885_v43 }
 0x2f6   :  { %v906_v0 = vrot.slane %v898_v60, 4 }
 0x2f7   :  { %v907_v1 = vrot.slane %v899_v61, 4 }
 0x2f8   :  { %914 = vst [vmem:[#allocation2 + $0x58] sm:$0xf0] %v906_v0  ;;  %v1620_v0 = vld [vmem:[%s1725_s1] ss:$8 sm:$0xf] }
 0x2f9   :  { %915 = vst [vmem:[#allocation2 + $0x10] sm:$0xf0] %v907_v1 }
 0x2fa   :  { %v919_v5 = vpop.permute.xlu0 %918  ;;  %v1563_v6 = vpop.permute.xlu2 %676 }
 0x2fb   :  { %v883_v7 = vpop.permute.xlu1 %882  ;;  %v929_v10 = vsel %vm435_vm8, %v925_v46, %v919_v5 }
 0x2fc   :  { %v884_v12 = vsel %vm380_vm6, %v881_v57, %v883_v7  ;;  %v887_v14 = vsel %vm380_vm6, %v883_v7, %v877_v47  ;;  %v943_v15 = vmul.f32 %v935_v2, %v929_v10  ;;  %v1606_v47 = vld [vmem:[%s1725_s1 + $0x6] ss:$8 sm:$0xf] }
 0x2fd   :  { %v900_v16 = vmul.f32 %v892_v3, %v884_v12  ;;  %v901_v55 = vmul.f32 %v893_v4, %v887_v14  ;;  %v862_v45 = vperm.slane %v1606_v47, 2  ;;  %v658_v4 = vperm.slane %v1620_v0, 2 }
 0x2fe   :  { %947 = vst [vmem:[#allocation2 + $0x90] sm:$0xf] %v943_v15 }
 0x2ff   :  { %v908_v19 = vrot.slane %v900_v16, 4  ;;  %v909_v20 = vrot.slane %v901_v55, 4 }
 0x301   :  { %916 = vst [vmem:[#allocation2 + $0x98] sm:$0xf0] %v908_v19 }
 0x302   :  { %917 = vst [vmem:[#allocation2 + $0x60] sm:$0xf0] %v909_v20  ;;  %v805_v23 = vpop.permute.xlu0 %804  ;;  %v1580_v24 = vpop.permute.xlu2 %750  ;;  %v758_v20 = vperm.slane %v1577_v18, 0 }
 0x303   :  { %v923_v25 = vpop.permute.xlu1 %922  ;;  %v815_v52 = vsel %vm282_vm5, %v811_v54, %v805_v23  ;;  %v752_v63 = vsel %vm194_vm3, %v1551_v48, %v1580_v24 }
 0x304   :  { %v926_v26 = vsel %vm435_vm8, %v923_v25, %v925_v46  ;;  %v829_v8 = vmul.f32 %v821_v21, %v815_v52  ;;  %v769_v13 = vmul.f32 %v761_v58, %v752_v63  ;;  %v759_v21 = vperm.slane %v1577_v18, 1 }
 0x305   :  { %v942_v49 = vmul.f32 %v934_v22, %v926_v26  ;;  %v968_v27 = vld [vmem:[#allocation2 + $0x90] sm:$0xf]  ;;  %v863_v22 = vperm.slane %v1606_v47, 3 }
 0x306   :  { %v837_v28 = vrot.slane %v829_v8, 4  ;;  %v777_v29 = vrot.slane %v769_v13, 4  ;;  %1191 = vmatpush.msk.msrb.mxu3 %vm239_vm0, %v968_v27  ;;  %v1178_v13 = vld [vmem:[%s1725_s1 + $0x2] ss:$8 sm:$0xf] }
 0x307   :  { %946 = vst [vmem:[#allocation2 + $0x70] sm:$0xf] %v942_v49 }
 0x308   :  { %845 = vst [vmem:[#allocation2 + $0x40] sm:$0xf0] %v837_v28  ;;  %v1651_v28 = vld [vmem:[%s1725_s1 + $0x1] ss:$8 sm:$0xf] }
 0x309   :  { %785 = vst [vmem:[#allocation2 + $0x80] sm:$0xf0] %v777_v29  ;;  %v729_v29 = vperm.slane %v1178_v13, 1 }
 0x30a   :  { %v921_v9 = vpop.permute.xlu0 %920  ;;  %v1622_v3 = vpop.permute.xlu2 %644 }
 0x30b   :  { %v809_v11 = vpop.permute.xlu1 %808  ;;  %v927_v33 = vsel %vm435_vm8, %v921_v9, %v923_v25  ;;  %v928_v34 = vsel %vm435_vm8, %v919_v5, %v921_v9  ;;  %v760_v5 = vperm.slane %v1577_v18, 2 }
 0x30c   :  { %v812_v35 = vsel %vm282_vm5, %v809_v11, %v811_v54  ;;  %v940_v36 = vmul.f32 %v932_v30, %v928_v34  ;;  %v941_v37 = vmul.f32 %v933_v31, %v927_v33  ;;  %v687_v30 = vperm.slane %v1651_v28, 1 }
 0x30d   :  { %v828_v38 = vmul.f32 %v820_v32, %v812_v35  ;;  %v688_v31 = vperm.slane %v1651_v28, 2 }
 0x30e   :  { %944 = vst [vmem:[#allocation2 + $0x20] sm:$0xf] %v940_v36  ;;  %v967_v39 = vld [vmem:[#allocation2 + $0x70] sm:$0xf] }
 0x30f   :  { %v836_v40 = vrot.slane %v828_v38, 4  ;;  %945 = vst [vmem:[#allocation2 + $0x48] sm:$0xf] %v941_v37  ;;  %1189 = vmatpush.msk.msrb.mxu2 %vm239_vm0, %v967_v39 }
 0x311   :  { %844 = vst [vmem:[#allocation2 + $0x28] sm:$0xf0] %v836_v40 }
 0x312   :  { %v1598_v41 = vpop.permute.xlu0 %716  ;;  %v721_v58 = vpop.permute.xlu2 %720 }
 0x313   :  { %v1600_v42 = vpop.permute.xlu1 %850 }
 0x315   :  { %v965_v44 = vld [vmem:[#allocation2 + $0x20] sm:$0xf] }
 0x316   :  { %1185 = vmatpush.msk.msrb.mxu0 %vm239_vm0, %v965_v44  ;;  %v966_v46 = vld [vmem:[#allocation2 + $0x48] sm:$0xf] }
 0x317   :  { %1187 = vmatpush.msk.msrb.mxu1 %vm239_vm0, %v966_v46 }
 0x318   :  { %v959_v19 = vld [vmem:[#allocation2 + $0x28] sm:$0xff] }
 0x31a   :  { %v807_v54 = vpop.permute.xlu0 %806  ;;  %v673_v9 = vpop.permute.xlu2 %672 }
 0x31b   :  { %v853_v56 = vpop.permute.xlu1 %852  ;;  %v813_v57 = vsel %vm282_vm5, %v807_v54, %v809_v11  ;;  %v814_v59 = vsel %vm282_vm5, %v805_v23, %v807_v54  ;;  %v731_v54 = vperm.slane %v1178_v13, 3 }
 0x31c   :  { %v854_v43 = vsel %vm337_vm7, %v1600_v42, %v853_v56  ;;  %v826_v60 = vmul.f32 %v818_v50, %v814_v59  ;;  %v827_v61 = vmul.f32 %v819_v51, %v813_v57  ;;  %v960_v51 = vld [vmem:[#allocation2 + $0x40] sm:$0xff] }
 0x31d   :  { %v870_v62 = vmul.f32 %v862_v45, %v854_v43  ;;  %v730_v45 = vperm.slane %v1178_v13, 2 }
 0x31e   :  { %v834_v1 = vrot.slane %v826_v60, 4  ;;  %v835_v2 = vrot.slane %v827_v61, 4  ;;  %v860_v61 = vperm.slane %v1606_v47, 0 }
 0x31f   :  { %874 = vst [vmem:[#allocation2 + $0x98] sm:$0xf] %v870_v62  ;;  %v861_v62 = vperm.slane %v1606_v47, 1 }
 0x320   :  { %842 = vst [vmem:[#allocation2 + $0x8] sm:$0xf0] %v834_v1 }
 0x321   :  { %843 = vst [vmem:[#allocation2 + $0x88] sm:$0xf0] %v835_v2 }
 0x322   :  { %v1626_v7 = vpop.permute.xlu0 %646 }
 0x323   :  { %v747_v10 = vpop.permute.xlu1 %746  ;;  %v651_v12 = vsel %vm54_vm1, %v1622_v3, %v1626_v7 }
 0x324   :  { %v753_v14 = vsel %vm194_vm3, %v747_v10, %v1551_v48  ;;  %v666_v15 = vmul.f32 %v658_v4, %v651_v12 }
 0x325   :  { %v768_v16 = vmul.f32 %v760_v5, %v753_v14  ;;  %v948_v14 = vld [vmem:[%s1729_s5] sm:$0xf] }
 0x326   :  { %670 = vst [vmem:[#allocation2 + $0x50] sm:$0xf] %v666_v15  ;;  %v963_v55 = vld [vmem:[#allocation2 + $0x98] sm:$0xff]  ;;  %v686_v15 = vperm.slane %v1651_v28, 0 }
 0x327   :  { %v776_v17 = vrot.slane %v768_v16, 4  ;;  %1036 = vmatpush.msrb.mxu2 %v963_v55 }
 0x329   :  { %784 = vst [vmem:[#allocation2 + $0x78] sm:$0xf0] %v776_v17  ;;  %1037 = vmatpush.msrb.mxu2 %v959_v19 }
 0x32a   :  { %v745_v23 = vpop.permute.xlu0 %744 }
 0x32b   :  { %v847_v25 = vpop.permute.xlu1 %846  ;;  %v754_v48 = vsel %vm194_vm3, %v745_v23, %v747_v10  ;;  %v755_v52 = vsel %vm194_vm3, %v1580_v24, %v745_v23  ;;  %v728_v24 = vperm.slane %v1178_v13, 0  ;;  %v656_v13 = vperm.slane %v1620_v0, 0 }
 0x32c   :  { %v857_v63 = vsel %vm337_vm7, %v853_v56, %v847_v25  ;;  %v766_v26 = vmul.f32 %v758_v20, %v755_v52  ;;  %v767_v8 = vmul.f32 %v759_v21, %v754_v48  ;;  %v958_v48 = vld [vmem:[#allocation2 + $0x88] sm:$0xff]  ;;  %v659_v52 = vperm.slane %v1620_v0, 3 }
 0x32d   :  { %v871_v18 = vmul.f32 %v863_v22, %v857_v63 }
 0x32e   :  { %v774_v49 = vrot.slane %v766_v26, 4  ;;  %v775_v27 = vrot.slane %v767_v8, 4 }
 0x32f   :  { %875 = vst [vmem:[#allocation2 + $0x60] sm:$0xf] %v871_v18 }
 0x330   :  { %782 = vst [vmem:[#allocation2 + $0x30] sm:$0xf0] %v774_v49  ;;  %v657_v49 = vperm.slane %v1620_v0, 1 }
 0x331   :  { %783 = vst [vmem:[#allocation2 + $0x68] sm:$0xf0] %v775_v27 }
 0x332   :  { %v715_v32 = vpop.permute.xlu0 %714 }
 0x333   :  { %v675_v11 = vpop.permute.xlu1 %674  ;;  %v724_v33 = vsel %vm151_vm4, %v715_v32, %v1598_v41  ;;  %v725_v34 = vsel %vm151_vm4, %v721_v58, %v715_v32 }
 0x334   :  { %v681_v35 = vsel %vm96_vm2, %v675_v11, %v1563_v6  ;;  %v682_v36 = vsel %vm96_vm2, %v673_v9, %v675_v11  ;;  %v736_v37 = vmul.f32 %v728_v24, %v725_v34  ;;  %v737_v38 = vmul.f32 %v729_v29, %v724_v33 }
 0x335   :  { %v695_v39 = vmul.f32 %v687_v30, %v682_v36  ;;  %v696_v40 = vmul.f32 %v688_v31, %v681_v35 }
 0x336   :  { %740 = vst [vmem:[#allocation2 + $0x30] sm:$0xf] %v736_v37  ;;  %v964_v44 = vld [vmem:[#allocation2 + $0x60] sm:$0xff] }
 0x337   :  { %v703_v46 = vrot.slane %v695_v39, 4  ;;  %v704_v50 = vrot.slane %v696_v40, 4  ;;  %741 = vst [vmem:[#allocation2 + $0x68] sm:$0xf] %v737_v38  ;;  %1056 = vmatpush.msrb.mxu3 %v964_v44 }
 0x339   :  { %711 = vst [vmem:[#allocation2 + $0x38] sm:$0xf0] %v703_v46  ;;  %1057 = vmatpush.msrb.mxu3 %v960_v51 }
 0x33a   :  { %712 = vst [vmem:[#allocation2 + $0x50] sm:$0xf0] %v704_v50 }
 0x33b   :  { %v719_v56 = vpop.permute.xlu1 %718 }
 0x33c   :  { %v722_v57 = vsel %vm151_vm4, %v719_v56, %v721_v58  ;;  %v723_v59 = vsel %vm151_vm4, %v1598_v41, %v719_v56 }
 0x33d   :  { %v738_v43 = vmul.f32 %v730_v45, %v723_v59  ;;  %v739_v60 = vmul.f32 %v731_v54, %v722_v57 }
 0x33e   :  { %v954_v26 = vld [vmem:[#allocation2 + $0x68] sm:$0xff] }
 0x33f   :  { %742 = vst [vmem:[#allocation2 + $0x78] sm:$0xf] %v738_v43 }
 0x340   :  { %743 = vst [vmem:[#allocation2 + $0x80] sm:$0xf] %v739_v60 }
 0x341   :  { %v951_v47 = vld [vmem:[#allocation2 + $0x50] sm:$0xff] }
 0x343   :  { %v849_v1 = vpop.permute.xlu1 %848 }
 0x344   :  { %v855_v2 = vsel %vm337_vm7, %v849_v1, %v1600_v42  ;;  %v856_v4 = vsel %vm337_vm7, %v847_v25, %v849_v1  ;;  %v689_v42 = vperm.slane %v1651_v28, 3  ;;  %v957_v25 = vld [vmem:[#allocation2 + $0x8] sm:$0xff] }
 0x345   :  { %v868_v5 = vmul.f32 %v860_v61, %v856_v4  ;;  %v869_v10 = vmul.f32 %v861_v62, %v855_v2 }
 0x346   :  { %v955_v12 = vld [vmem:[#allocation2 + $0x78] sm:$0xff] }
 0x347   :  { %872 = vst [vmem:[#allocation2 + $0x58] sm:$0xf] %v868_v5  ;;  %1038 = vmatpush.msrb.mxu2 %v955_v12  ;;  %v956_v41 = vld [vmem:[#allocation2 + $0x80] sm:$0xff] }
 0x348   :  { %873 = vst [vmem:[#allocation2 + $0x10] sm:$0xf] %v869_v10  ;;  %1058 = vmatpush.msrb.mxu3 %v956_v41 }
 0x349   :  { %1039 = vmatpush.msrb.mxu2 %v951_v47 }
 0x34a   :  { %1190 = vmatmul.msk.f32.vlgmr.msrb.gmra.mxu2 %vm480_vm9, %v948_v14 }
 0x34b   :  { %v679_v16 = vpop.permute.xlu1 %678 }
 0x34c   :  { %v680_v55 = vsel %vm96_vm2, %v1563_v6, %v679_v16  ;;  %v683_v17 = vsel %vm96_vm2, %v679_v16, %v673_v9  ;;  %v953_v6 = vld [vmem:[#allocation2 + $0x30] sm:$0xff] }
 0x34d   :  { %v694_v19 = vmul.f32 %v686_v15, %v683_v17  ;;  %v697_v20 = vmul.f32 %v689_v42, %v680_v55  ;;  %v1101_v15 = vld [vmem:[%s1730_s6] sm:$0xf] }
 0x34e   :  { %v961_v21 = vld [vmem:[#allocation2 + $0x58] sm:$0xff] }
 0x34f   :  { %v702_v58 = vrot.slane %v694_v19, 4  ;;  %v705_v22 = vrot.slane %v697_v20, 4  ;;  %996 = vmatpush.msrb.mxu0 %v961_v21  ;;  %v962_v23 = vld [vmem:[#allocation2 + $0x10] sm:$0xff]  ;;  %v1116_v55 = vld [vmem:[%s1731_s7] sm:$0xf] }
 0x350   :  { %1016 = vmatpush.msrb.mxu1 %v962_v23 }
 0x351   :  { %710 = vst [vmem:[#allocation2] sm:$0xf0] %v702_v58  ;;  %997 = vmatpush.msrb.mxu0 %v957_v25 }
 0x352   :  { %713 = vst [vmem:[#allocation2 + $0x18] sm:$0xf0] %v705_v22  ;;  %1017 = vmatpush.msrb.mxu1 %v958_v48 }
 0x353   :  { %v649_v63 = vpop.permute.xlu1 %648  ;;  %998 = vmatpush.msrb.mxu0 %v953_v6  ;;  %v1130_v6 = vld.sshfl [vmem:[#allocation1 + $0x8] sm:$0xff pattern:$0x75316420] }
 0x354   :  { %v650_v8 = vsel %vm54_vm1, %v1626_v7, %v649_v63  ;;  %1018 = vmatpush.msrb.mxu1 %v954_v26  ;;  %v1132_v26 = vld.sshfl [vmem:[#allocation1 + $0x18] sm:$0xff pattern:$0x75316420] }
 0x355   :  { %v667_v18 = vmul.f32 %v659_v52, %v650_v8  ;;  %v1129_v52 = vld.sshfl [vmem:[#allocation1] sm:$0xff pattern:$0x75316420] }
 0x357   :  { %671 = vst [vmem:[#allocation2 + $0x18] sm:$0xf] %v667_v18 }
 0x35b   :  { %v643_v27 = vpop.permute.xlu1 %642 }
 0x35c   :  { %v652_v28 = vsel %vm54_vm1, %v643_v27, %v1622_v3  ;;  %v653_v24 = vsel %vm54_vm1, %v649_v63, %v643_v27  ;;  %v1131_v63 = vld.sshfl [vmem:[#allocation1 + $0x10] sm:$0xff pattern:$0x75316420] }
 0x35d   :  { %v664_v29 = vmul.f32 %v656_v13, %v653_v24  ;;  %v665_v30 = vmul.f32 %v657_v49, %v652_v28 }
 0x35e   :  { %v952_v31 = vld [vmem:[#allocation2 + $0x18] sm:$0xff] }
 0x35f   :  { %668 = vst [vmem:[#allocation2] sm:$0xf] %v664_v29  ;;  %1059 = vmatpush.msrb.mxu3 %v952_v31 }
 0x360   :  { %669 = vst [vmem:[#allocation2 + $0x38] sm:$0xf] %v665_v30  ;;  %1192 = vmatmul.msk.f32.vlgmr.msrb.gmra.mxu3 %vm480_vm9, %v948_v14 }
 0x366   :  { %v949_v7 = vld [vmem:[#allocation2] sm:$0xff] }
 0x367   :  { %999 = vmatpush.msrb.mxu0 %v949_v7  ;;  %v950_v32 = vld [vmem:[#allocation2 + $0x38] sm:$0xff] }
 0x368   :  { %1019 = vmatpush.msrb.mxu1 %v950_v32  ;;  %1186 = vmatmul.msk.f32.vlgmr.msrb.gmra.mxu0 %vm480_vm9, %v948_v14 }
 0x369   :  { %1188 = vmatmul.msk.f32.vlgmr.msrb.gmra.mxu1 %vm480_vm9, %v948_v14 }
 0x3cd   :  { %v1041_v0 = vpop.f32.mrf.mxu2 }
 0x3ce   :  { %v1076_v9 = vmul.f32 %v1041_v0, %v1041_v0  ;;  %v1067_v37 = vsel %vm239_vm0, %v1041_v0, 0.0 }
 0x3d0   :  { %v1081_v46 = vsel %vm239_vm0, %v1076_v9, 0.0 }
 0x3e3   :  { %v1061_v3 = vpop.f32.mrf.mxu3 }
 0x3e4   :  { %v1077_v38 = vmul.f32 %v1061_v3, %v1061_v3  ;;  %v1069_v50 = vsel %vm239_vm0, %v1061_v3, 0.0 }
 0x3e5   :  { %v1001_v53 = vpop.f32.mrf.mxu0 }
 0x3e6   :  { %v1064_v11 = vsel %vm239_vm0, %v1001_v53, 0.0  ;;  %v1074_v33 = vmul.f32 %v1001_v53, %v1001_v53  ;;  %v1021_v34 = vpop.f32.mrf.mxu1  ;;  %v1083_v54 = vsel %vm239_vm0, %v1077_v38, 0.0 }
 0x3e7   :  { %v1065_v35 = vsel %vm239_vm0, %v1021_v34, 0.0  ;;  %v1075_v36 = vmul.f32 %v1021_v34, %v1021_v34 }
 0x3e8   :  { %v1078_v39 = vsel %vm239_vm0, %v1074_v33, 0.0  ;;  %v1066_v40 = vadd.f32 %v1065_v35, %v1064_v11 }
 0x3e9   :  { %v1079_v44 = vsel %vm239_vm0, %v1075_v36, 0.0 }
 0x3ea   :  { %v1080_v51 = vadd.f32 %v1079_v44, %v1078_v39  ;;  %v1068_v45 = vadd.f32 %v1067_v37, %v1066_v40 }
 0x3ec   :  { %v1070_v56 = vadd.f32 %v1069_v50, %v1068_v45  ;;  %v1082_v57 = vadd.f32 %v1081_v46, %v1080_v51 }
 0x3ee   :  { %1071 = vadd.xlane.f32.xlu2 %v1070_v56  ;;  %v1084_v59 = vadd.f32 %v1083_v54, %v1082_v57 }
 0x3f0   :  { %1085 = vadd.xlane.f32.xlu0 %v1084_v59 }
 0x461   :  { %v1072_v43 = vpop.xlane.xlu2 %1071 }
 0x462   :  { %v1073_v60 = vmul.f32 0.001953125, %v1072_v43 }
 0x463   :  { %v1086_v61 = vpop.xlane.xlu0 %1085 }
 0x464   :  { %v1087_v62 = vmul.f32 0.001953125, %v1086_v61  ;;  %v1088_v1 = vmul.f32 %v1073_v60, %v1073_v60  ;;  %v1103_v19 = vsub.f32 %v1001_v53, %v1073_v60  ;;  %v1104_v20 = vsub.f32 %v1021_v34, %v1073_v60 }
 0x465   :  { %v1105_v21 = vsub.f32 %v1041_v0, %v1073_v60  ;;  %v1106_v58 = vsub.f32 %v1061_v3, %v1073_v60 }
 0x466   :  { %v1089_v2 = vsub.f32 %v1087_v62, %v1088_v1 }
 0x468   :  { %v1090_v4 = vadd.f32 1e-05, %v1089_v2 }
 0x46a   :  { %1206 = vrsqrt.f32 %v1090_v4  ;;  %vm1097_vm14 = vweird.f32 %v1090_v4 }
 0x470   :  { %v1207_v5 = vpop.eup %1206 }
 0x471   :  { %v1092_v10 = vmul.f32 %v1207_v5, %v1090_v4  ;;  %vm1098_vm13 = vweird.f32 %v1207_v5 }
 0x472   :  { %vm1099_vm15 = vmor %vm1097_vm14, %vm1098_vm13 }
 0x473   :  { %v1093_v12 = vmul.f32 %v1207_v5, %v1092_v10 }
 0x475   :  { %v1094_v41 = vmul.f32 0.5, %v1093_v12 }
 0x477   :  { %v1095_v14 = vsub.f32 1.5, %v1094_v41 }
 0x479   :  { %v1096_v47 = vmul.f32 %v1207_v5, %v1095_v14 }
 0x47b   :  { %v1100_v42 = vsel %vm1099_vm15, %v1207_v5, %v1096_v47 }
 0x47c   :  { %v1102_v16 = vmul.f32 %v1101_v15, %v1100_v42 }
 0x47e   :  { %1109 = vperm.xlu1 %1202, %v1102_v16  }
 0x486   :  { %1119 = vperm.xlu1 %1202, %v1116_v55  }
 0x4f0   :  { %v1110_v17 = vpop.permute.xlu1 %1109 }
 0x4f1   :  { %v1112_v22 = vmul.f32 %v1110_v17, %v1103_v19  ;;  %v1113_v23 = vmul.f32 %v1110_v17, %v1104_v20  ;;  %v1114_v25 = vmul.f32 %v1110_v17, %v1105_v21  ;;  %v1115_v48 = vmul.f32 %v1110_v17, %v1106_v58 }
 0x4f8   :  { %v1120_v8 = vpop.permute.xlu1 %1119 }
 0x4f9   :  { %v1122_v18 = vadd.f32 %v1120_v8, %v1112_v22  ;;  %v1123_v13 = vadd.f32 %v1120_v8, %v1113_v23  ;;  %v1124_v49 = vadd.f32 %v1120_v8, %v1114_v25  ;;  %v1125_v27 = vadd.f32 %v1120_v8, %v1115_v48 }
 0x4fb   :  { %v1137_v28 = vadd.f32 %v1129_v52, %v1122_v18  ;;  %v1138_v24 = vadd.f32 %v1130_v6, %v1123_v13  ;;  %v1139_v29 = vadd.f32 %v1131_v63, %v1124_v49  ;;  %v1140_v30 = vadd.f32 %v1132_v26, %v1125_v27 }
 0x4fd   :  { %v1142_v31 = vmax.f32 %v1138_v24, 0.0  ;;  %v1144_v7 = vmax.f32 %v1140_v30, 0.0  ;;  %v1141_v32 = vmax.f32 %v1137_v28, 0.0  ;;  %v1143_v0 = vmax.f32 %v1139_v29, 0.0 }
 0x4ff   :  { %v1149_v3 = vrot.slane %v1142_v31, 4  ;;  %v1150_v53 = vrot.slane %v1144_v7, 4 }
 0x501   :  { %v1151_v9 = vsel %vm239_vm0, %v1141_v32, %v1149_v3  ;;  %v1152_v11 = vsel %vm239_vm0, %v1143_v0, %v1150_v53 }
 0x502   :  { %1155 = vst [vmem:[%s1732_s8] sm:$0xff] %v1151_v9 }
 0x503   :  { %1156 = vst [vmem:[%s1732_s8 + $0x8] sm:$0xff] %v1152_v11 }

</bundles_post_ra>
